<compile_context>
chip_gen: v6e
topology: v6e:2x2x1
jax: 0.10.0
libtpu: 0.0.40
codegen_flags: <defaults>
</compile_context>

<pallas_src>
import functools

import jax
import jax.numpy as jnp
from jax.experimental import pallas as pl
from jax.experimental.pallas import tpu as pltpu


def residual_block_kernel(x_ref, w_ref, b_ref, o_ref, *, height, width):
    # x_ref: (1, C, H*W) f32   one image; channels in sublanes, pixels in lanes
    # w_ref: (2, C, 9*C) bf16  conv1/conv2 weights, w[n][cout, k*C + cin], k = dy*3 + dx
    # b_ref: (2, C, 1)   f32   conv1/conv2 biases
    # o_ref: (1, C, H*W) f32
    c = x_ref.shape[1]
    p = height * width
    x = x_ref[0]                                                      # (C, P) f32

    # Which lane is image-column 0 / W-1 (computed once, reused by both convs).
    col = jax.lax.broadcasted_iota(jnp.int32, (c, p), 1) % width
    is_first_col = col == 0
    is_last_col = col == width - 1

    # Reflection-padded shifted windows, built entirely as values in the flat
    # (C, H*W) layout: row shifts are exact lane-slice concats, column shifts are
    # +/-1 lane shifts fixed up at the image border with a select.
    def rows_up(a):      # source row h-1; row 0 reflects to row 1          (dy = 0)
        return jnp.concatenate(
            [a[:, width:2 * width], a[:, :(height - 1) * width]], axis=1)

    def rows_down(a):    # source row h+1; row H-1 reflects to row H-2      (dy = 2)
        return jnp.concatenate(
            [a[:, width:], a[:, (height - 2) * width:(height - 1) * width]], axis=1)

    def lanes_next(a):   # a[:, p+1]  (wrap junk in last lane — always masked out)
        return jnp.concatenate([a[:, 1:], a[:, :1]], axis=1)

    def lanes_prev(a):   # a[:, p-1]  (wrap junk in lane 0   — always masked out)
        return jnp.concatenate([a[:, :1], a[:, :-1]], axis=1)

    def conv3x3_reflect(a, w_tap, bias):
        # a: (C, P) f32.  One MXU matmul per conv: (C, 9C) @ (9C, P) -> (C, P) f32.
        wins = []
        for r in (rows_up(a), a, rows_down(a)):                       # dy = 0, 1, 2
            nxt, prv = lanes_next(r), lanes_prev(r)
            wins.append(jnp.where(is_first_col, nxt, prv).astype(jnp.bfloat16))  # dx = 0
            wins.append(r.astype(jnp.bfloat16))                                   # dx = 1
            wins.append(jnp.where(is_last_col, prv, nxt).astype(jnp.bfloat16))   # dx = 2
        patches = jnp.concatenate(wins, axis=0)                       # (9C, P) bf16 im2col
        acc = jnp.dot(w_tap, patches, preferred_element_type=jnp.float32)
        return acc + bias                                             # fused bias epilogue

    hidden = jnp.maximum(conv3x3_reflect(x, w_ref[0], b_ref[0]), 0.0)  # conv1 + ReLU
    out = conv3x3_reflect(hidden, w_ref[1], b_ref[1]) + x              # conv2 + residual
    o_ref[0] = jnp.maximum(out, 0.0)                                   # final ReLU (lane-dense store)


@jax.jit
def residual_block_forward(x, w1, b1, w2, b2):
    """x: (B, C, H, W) float32 (PyTorch NCHW).  Conv weights (C, C, 3, 3), biases (C,)."""
    b, c, h, w = x.shape
    assert h >= 2 and w >= 2, "ReflectionPad2d(1) requires H, W >= 2"
    p = h * w

    # (Cout, Cin, 3, 3) -> (Cout, 9*Cin), tap order k = dy*3 + dx; bf16 for the MXU.
    def relayout(wt):
        return jnp.transpose(wt, (0, 2, 3, 1)).reshape(c, 9 * c)

    w_all = jnp.stack([relayout(w1), relayout(w2)]).astype(jnp.bfloat16)   # (2, C, 9C)
    b_all = jnp.stack([b1, b2]).reshape(2, c, 1).astype(jnp.float32)       # (2, C, 1)
    x_flat = x.reshape(b, c, p)                                            # free reshape, no transpose

    flops = b * 2 * 2 * c * (9 * c) * p                                    # 2 convs, 2 flop/MAC
    bytes_accessed = 2 * x_flat.size * 4 + w_all.size * 2 + b_all.size * 4

    out_flat = pl.pallas_call(
        functools.partial(residual_block_kernel, height=h, width=w),
        out_shape=jax.ShapeDtypeStruct((b, c, p), jnp.float32),
        grid=(b,),
        in_specs=[
            pl.BlockSpec((1, c, p), lambda i: (i, 0, 0)),          # one image per grid step
            pl.BlockSpec((2, c, 9 * c), lambda i: (0, 0, 0)),      # both conv weights, resident
            pl.BlockSpec((2, c, 1), lambda i: (0, 0, 0)),          # both biases
        ],
        out_specs=pl.BlockSpec((1, c, p), lambda i: (i, 0, 0)),    # lane-dense (H*W = 256) store
        compiler_params=pltpu.CompilerParams(dimension_semantics=("parallel",)),
        cost_estimate=pl.CostEstimate(flops=flops, transcendentals=0,
                                      bytes_accessed=bytes_accessed),
    )(x_flat, w_all, b_all)

    return out_flat.reshape(b, c, h, w)                                   # back to NCHW (free)


def _reference(x, w1, b1, w2, b2, mxu_dtype=jnp.float32, precision=None):
    """Pure-JAX reference matching the PyTorch ResidualBlock semantics.
    mxu_dtype=bfloat16 reproduces the kernel's bf16-operand / f32-accumulate numerics."""
    def conv_same(a, wt, bias):
        a = jnp.pad(a, ((0, 0), (0, 0), (1, 1), (1, 1)), mode="reflect")
        y = jax.lax.conv_general_dilated(
            a.astype(mxu_dtype), wt.astype(mxu_dtype),
            window_strides=(1, 1), padding="VALID",
            dimension_numbers=("NCHW", "OIHW", "NCHW"),
            preferred_element_type=jnp.float32, precision=precision)
        return y + bias.reshape(1, -1, 1, 1)

    hidden = jax.nn.relu(conv_same(x, w1, b1))
    return jax.nn.relu(conv_same(hidden, w2, b2) + x)


if __name__ == "__main__":
    B, C, H, W = 2, 32, 16, 16        # residual block requires in_channels == out_channels
    key = jax.random.PRNGKey(0)
    kx, kw1, kb1, kw2, kb2 = jax.random.split(key, 5)

    x = jax.random.normal(kx, (B, C, H, W), jnp.float32)
    w1 = jax.random.normal(kw1, (C, C, 3, 3), jnp.float32) * 0.1
    b1 = jax.random.normal(kb1, (C,), jnp.float32) * 0.1
    w2 = jax.random.normal(kw2, (C, C, 3, 3), jnp.float32) * 0.1
    b2 = jax.random.normal(kb2, (C,), jnp.float32) * 0.1

    out = jax.block_until_ready(residual_block_forward(x, w1, b1, w2, b2))

    # Structural check: reference using the same bf16-operand / f32-accumulate numerics.
    ref_bf16 = jax.block_until_ready(_reference(x, w1, b1, w2, b2, mxu_dtype=jnp.bfloat16))
    # Semantic check: full-f32 reference (PyTorch semantics); tolerance covers the
    # bf16 MXU error floor of a K = 9*C = 288 contraction (per the perf review).
    ref_f32 = jax.block_until_ready(_reference(x, w1, b1, w2, b2, mxu_dtype=jnp.float32,
                                               precision=jax.lax.Precision.HIGHEST))

    assert out.shape == (B, C, H, W), out.shape
    assert out.dtype == jnp.float32
    assert bool(jnp.all(jnp.isfinite(out)))
    assert bool(jnp.all(out >= 0.0))                                  # final ReLU
    assert bool(jnp.allclose(out, ref_bf16, rtol=5e-3, atol=5e-3)), \
        float(jnp.max(jnp.abs(out - ref_bf16)))
    assert bool(jnp.allclose(out, ref_f32, rtol=3e-2, atol=3e-2)), \
        float(jnp.max(jnp.abs(out - ref_f32)))
    print("KERNEL_OK")
</pallas_src>

<mosaic_0001>
module attributes {stable_mosaic.version = 11 : i64} {
  func.func @residual_block_kernel(%arg0: i32, %arg1: memref<1x32x256xf32, #tpu.memory_space<vmem>>, %arg2: memref<2x32x288xbf16, #tpu.memory_space<vmem>>, %arg3: memref<2x32x1xf32, #tpu.memory_space<vmem>>, %arg4: memref<1x32x256xf32, #tpu.memory_space<vmem>>) attributes {dimension_semantics = [#tpu.dimension_semantics<parallel>], iteration_bounds = array<i64: 2>, scalar_prefetch = 0 : i64, scratch_operands = 0 : i64, tpu.core_type = #tpu.core_type<tc>, window_params = [{transform_indices = @transform_0, window_bounds = array<i64: 1, 32, 256>}, {pipeline_mode = #tpu.pipeline_mode<synchronous>, transform_indices = @transform_1, window_bounds = array<i64: 2, 32, 288>}, {pipeline_mode = #tpu.pipeline_mode<synchronous>, transform_indices = @transform_2, window_bounds = array<i64: 2, 32, 1>}, {transform_indices = @transform_3, window_bounds = array<i64: 1, 32, 256>}]} {
    %c0 = arith.constant 0 : index
    %c0_0 = arith.constant 0 : index
    %c0_1 = arith.constant 0 : index
    %0 = vector.load %arg1[%c0, %c0_0, %c0_1] : memref<1x32x256xf32, #tpu.memory_space<vmem>>, vector<1x32x256xf32>
    %1 = vector.shape_cast %0 : vector<1x32x256xf32> to vector<32x256xf32>
    %2 = tpu.iota {dimensions = array<i32: 1>} : vector<32x256xi32>
    %c16_i32 = arith.constant 16 : i32
    %c0_i32 = arith.constant 0 : i32
    %3 = arith.cmpi eq, %c16_i32, %c0_i32 : i32
    %c1_i32 = arith.constant 1 : i32
    %4 = arith.select %3, %c1_i32, %c16_i32 : i32
    %5 = vector.broadcast %4 : i32 to vector<32x256xi32>
    %6 = arith.remsi %2, %5 : vector<32x256xi32>
    %c0_i32_2 = arith.constant 0 : i32
    %7 = vector.broadcast %c0_i32_2 : i32 to vector<32x256xi32>
    %8 = arith.cmpi ne, %6, %7 : vector<32x256xi32>
    %c0_i32_3 = arith.constant 0 : i32
    %9 = vector.broadcast %c0_i32_3 : i32 to vector<32x256xi32>
    %10 = arith.cmpi slt, %6, %9 : vector<32x256xi32>
    %c0_i32_4 = arith.constant 0 : i32
    %11 = arith.cmpi slt, %4, %c0_i32_4 : i32
    %12 = vector.broadcast %11 : i1 to vector<32x256xi1>
    %13 = vector.broadcast %12 : vector<32x256xi1> to vector<32x256xi1>
    %14 = arith.xori %10, %13 : vector<32x256xi1>
    %15 = arith.andi %14, %8 : vector<32x256xi1>
    %16 = vector.broadcast %4 : i32 to vector<32x256xi32>
    %17 = arith.addi %6, %16 : vector<32x256xi32>
    %18 = arith.select %15, %17, %6 : vector<32x256xi1>, vector<32x256xi32>
    %c0_i32_5 = arith.constant 0 : i32
    %19 = vector.broadcast %c0_i32_5 : i32 to vector<32x256xi32>
    %20 = arith.cmpi eq, %18, %19 : vector<32x256xi32>
    %c15_i32 = arith.constant 15 : i32
    %21 = vector.broadcast %c15_i32 : i32 to vector<32x256xi32>
    %22 = arith.cmpi eq, %18, %21 : vector<32x256xi32>
    %c0_6 = arith.constant 0 : index
    %c0_7 = arith.constant 0 : index
    %c0_8 = arith.constant 0 : index
    %23 = vector.load %arg2[%c0_6, %c0_7, %c0_8] : memref<2x32x288xbf16, #tpu.memory_space<vmem>>, vector<1x32x288xbf16>
    %24 = vector.shape_cast %23 : vector<1x32x288xbf16> to vector<32x288xbf16>
    %c0_9 = arith.constant 0 : index
    %c0_10 = arith.constant 0 : index
    %c0_11 = arith.constant 0 : index
    %25 = vector.load %arg3[%c0_9, %c0_10, %c0_11] : memref<2x32x1xf32, #tpu.memory_space<vmem>>, vector<1x32x1xf32>
    %26 = vector.shape_cast %25 : vector<1x32x1xf32> to vector<32x1xf32>
    %27 = vector.extract_strided_slice %1 {offsets = [0, 16], sizes = [32, 16], strides = [1, 1]} : vector<32x256xf32> to vector<32x16xf32>
    %28 = vector.extract_strided_slice %1 {offsets = [0, 0], sizes = [32, 240], strides = [1, 1]} : vector<32x256xf32> to vector<32x240xf32>
    %29 = tpu.concatenate %27, %28 in 1 : vector<32x16xf32>, vector<32x240xf32> -> vector<32x256xf32>
    %30 = vector.extract_strided_slice %1 {offsets = [0, 16], sizes = [32, 240], strides = [1, 1]} : vector<32x256xf32> to vector<32x240xf32>
    %31 = vector.extract_strided_slice %1 {offsets = [0, 224], sizes = [32, 16], strides = [1, 1]} : vector<32x256xf32> to vector<32x16xf32>
    %32 = tpu.concatenate %30, %31 in 1 : vector<32x240xf32>, vector<32x16xf32> -> vector<32x256xf32>
    %33 = vector.extract_strided_slice %29 {offsets = [0, 1], sizes = [32, 255], strides = [1, 1]} : vector<32x256xf32> to vector<32x255xf32>
    %34 = vector.extract_strided_slice %29 {offsets = [0, 0], sizes = [32, 1], strides = [1, 1]} : vector<32x256xf32> to vector<32x1xf32>
    %35 = tpu.concatenate %33, %34 in 1 : vector<32x255xf32>, vector<32x1xf32> -> vector<32x256xf32>
    %36 = vector.extract_strided_slice %29 {offsets = [0, 0], sizes = [32, 1], strides = [1, 1]} : vector<32x256xf32> to vector<32x1xf32>
    %37 = vector.extract_strided_slice %29 {offsets = [0, 0], sizes = [32, 255], strides = [1, 1]} : vector<32x256xf32> to vector<32x255xf32>
    %38 = tpu.concatenate %36, %37 in 1 : vector<32x1xf32>, vector<32x255xf32> -> vector<32x256xf32>
    %39 = arith.select %20, %35, %38 : vector<32x256xi1>, vector<32x256xf32>
    %40 = arith.truncf %39 : vector<32x256xf32> to vector<32x256xbf16>
    %41 = arith.truncf %29 : vector<32x256xf32> to vector<32x256xbf16>
    %42 = arith.select %22, %38, %35 : vector<32x256xi1>, vector<32x256xf32>
    %43 = arith.truncf %42 : vector<32x256xf32> to vector<32x256xbf16>
    %44 = vector.extract_strided_slice %1 {offsets = [0, 1], sizes = [32, 255], strides = [1, 1]} : vector<32x256xf32> to vector<32x255xf32>
    %45 = vector.extract_strided_slice %1 {offsets = [0, 0], sizes = [32, 1], strides = [1, 1]} : vector<32x256xf32> to vector<32x1xf32>
    %46 = tpu.concatenate %44, %45 in 1 : vector<32x255xf32>, vector<32x1xf32> -> vector<32x256xf32>
    %47 = vector.extract_strided_slice %1 {offsets = [0, 0], sizes = [32, 1], strides = [1, 1]} : vector<32x256xf32> to vector<32x1xf32>
    %48 = vector.extract_strided_slice %1 {offsets = [0, 0], sizes = [32, 255], strides = [1, 1]} : vector<32x256xf32> to vector<32x255xf32>
    %49 = tpu.concatenate %47, %48 in 1 : vector<32x1xf32>, vector<32x255xf32> -> vector<32x256xf32>
    %50 = arith.select %20, %46, %49 : vector<32x256xi1>, vector<32x256xf32>
    %51 = arith.truncf %50 : vector<32x256xf32> to vector<32x256xbf16>
    %52 = arith.truncf %1 : vector<32x256xf32> to vector<32x256xbf16>
    %53 = arith.select %22, %49, %46 : vector<32x256xi1>, vector<32x256xf32>
    %54 = arith.truncf %53 : vector<32x256xf32> to vector<32x256xbf16>
    %55 = vector.extract_strided_slice %32 {offsets = [0, 1], sizes = [32, 255], strides = [1, 1]} : vector<32x256xf32> to vector<32x255xf32>
    %56 = vector.extract_strided_slice %32 {offsets = [0, 0], sizes = [32, 1], strides = [1, 1]} : vector<32x256xf32> to vector<32x1xf32>
    %57 = tpu.concatenate %55, %56 in 1 : vector<32x255xf32>, vector<32x1xf32> -> vector<32x256xf32>
    %58 = vector.extract_strided_slice %32 {offsets = [0, 0], sizes = [32, 1], strides = [1, 1]} : vector<32x256xf32> to vector<32x1xf32>
    %59 = vector.extract_strided_slice %32 {offsets = [0, 0], sizes = [32, 255], strides = [1, 1]} : vector<32x256xf32> to vector<32x255xf32>
    %60 = tpu.concatenate %58, %59 in 1 : vector<32x1xf32>, vector<32x255xf32> -> vector<32x256xf32>
    %61 = arith.select %20, %57, %60 : vector<32x256xi1>, vector<32x256xf32>
    %62 = arith.truncf %61 : vector<32x256xf32> to vector<32x256xbf16>
    %63 = arith.truncf %32 : vector<32x256xf32> to vector<32x256xbf16>
    %64 = arith.select %22, %60, %57 : vector<32x256xi1>, vector<32x256xf32>
    %65 = arith.truncf %64 : vector<32x256xf32> to vector<32x256xbf16>
    %66 = tpu.concatenate %40, %41, %43, %51, %52, %54, %62, %63, %65 in 0 : vector<32x256xbf16>, vector<32x256xbf16>, vector<32x256xbf16>, vector<32x256xbf16>, vector<32x256xbf16>, vector<32x256xbf16>, vector<32x256xbf16>, vector<32x256xbf16>, vector<32x256xbf16> -> vector<288x256xbf16>
    %cst = arith.constant dense<0.000000e+00> : vector<32x256xf32>
    %67 = tpu.matmul %24, %66, %cst {dimension_numbers = #tpu.dot_dimension_numbers<[1], [0], [0], [1], [0, 0, 1, 1], [], []>} : vector<32x288xbf16>, vector<288x256xbf16>, vector<32x256xf32> -> vector<32x256xf32>
    %68 = vector.broadcast %26 : vector<32x1xf32> to vector<32x256xf32>
    %69 = arith.addf %67, %68 : vector<32x256xf32>
    %cst_12 = arith.constant 0.000000e+00 : f32
    %70 = vector.broadcast %cst_12 : f32 to vector<32x256xf32>
    %71 = arith.maximumf %69, %70 : vector<32x256xf32>
    %c1 = arith.constant 1 : index
    %c0_13 = arith.constant 0 : index
    %c0_14 = arith.constant 0 : index
    %72 = vector.load %arg2[%c1, %c0_13, %c0_14] : memref<2x32x288xbf16, #tpu.memory_space<vmem>>, vector<1x32x288xbf16>
    %73 = vector.shape_cast %72 : vector<1x32x288xbf16> to vector<32x288xbf16>
    %c1_15 = arith.constant 1 : index
    %c0_16 = arith.constant 0 : index
    %c0_17 = arith.constant 0 : index
    %74 = vector.load %arg3[%c1_15, %c0_16, %c0_17] : memref<2x32x1xf32, #tpu.memory_space<vmem>>, vector<1x32x1xf32>
    %75 = vector.shape_cast %74 : vector<1x32x1xf32> to vector<32x1xf32>
    %76 = vector.extract_strided_slice %71 {offsets = [0, 16], sizes = [32, 16], strides = [1, 1]} : vector<32x256xf32> to vector<32x16xf32>
    %77 = vector.extract_strided_slice %71 {offsets = [0, 0], sizes = [32, 240], strides = [1, 1]} : vector<32x256xf32> to vector<32x240xf32>
    %78 = tpu.concatenate %76, %77 in 1 : vector<32x16xf32>, vector<32x240xf32> -> vector<32x256xf32>
    %79 = vector.extract_strided_slice %71 {offsets = [0, 16], sizes = [32, 240], strides = [1, 1]} : vector<32x256xf32> to vector<32x240xf32>
    %80 = vector.extract_strided_slice %71 {offsets = [0, 224], sizes = [32, 16], strides = [1, 1]} : vector<32x256xf32> to vector<32x16xf32>
    %81 = tpu.concatenate %79, %80 in 1 : vector<32x240xf32>, vector<32x16xf32> -> vector<32x256xf32>
    %82 = vector.extract_strided_slice %78 {offsets = [0, 1], sizes = [32, 255], strides = [1, 1]} : vector<32x256xf32> to vector<32x255xf32>
    %83 = vector.extract_strided_slice %78 {offsets = [0, 0], sizes = [32, 1], strides = [1, 1]} : vector<32x256xf32> to vector<32x1xf32>
    %84 = tpu.concatenate %82, %83 in 1 : vector<32x255xf32>, vector<32x1xf32> -> vector<32x256xf32>
    %85 = vector.extract_strided_slice %78 {offsets = [0, 0], sizes = [32, 1], strides = [1, 1]} : vector<32x256xf32> to vector<32x1xf32>
    %86 = vector.extract_strided_slice %78 {offsets = [0, 0], sizes = [32, 255], strides = [1, 1]} : vector<32x256xf32> to vector<32x255xf32>
    %87 = tpu.concatenate %85, %86 in 1 : vector<32x1xf32>, vector<32x255xf32> -> vector<32x256xf32>
    %88 = arith.select %20, %84, %87 : vector<32x256xi1>, vector<32x256xf32>
    %89 = arith.truncf %88 : vector<32x256xf32> to vector<32x256xbf16>
    %90 = arith.truncf %78 : vector<32x256xf32> to vector<32x256xbf16>
    %91 = arith.select %22, %87, %84 : vector<32x256xi1>, vector<32x256xf32>
    %92 = arith.truncf %91 : vector<32x256xf32> to vector<32x256xbf16>
    %93 = vector.extract_strided_slice %71 {offsets = [0, 1], sizes = [32, 255], strides = [1, 1]} : vector<32x256xf32> to vector<32x255xf32>
    %94 = vector.extract_strided_slice %71 {offsets = [0, 0], sizes = [32, 1], strides = [1, 1]} : vector<32x256xf32> to vector<32x1xf32>
    %95 = tpu.concatenate %93, %94 in 1 : vector<32x255xf32>, vector<32x1xf32> -> vector<32x256xf32>
    %96 = vector.extract_strided_slice %71 {offsets = [0, 0], sizes = [32, 1], strides = [1, 1]} : vector<32x256xf32> to vector<32x1xf32>
    %97 = vector.extract_strided_slice %71 {offsets = [0, 0], sizes = [32, 255], strides = [1, 1]} : vector<32x256xf32> to vector<32x255xf32>
    %98 = tpu.concatenate %96, %97 in 1 : vector<32x1xf32>, vector<32x255xf32> -> vector<32x256xf32>
    %99 = arith.select %20, %95, %98 : vector<32x256xi1>, vector<32x256xf32>
    %100 = arith.truncf %99 : vector<32x256xf32> to vector<32x256xbf16>
    %101 = arith.truncf %71 : vector<32x256xf32> to vector<32x256xbf16>
    %102 = arith.select %22, %98, %95 : vector<32x256xi1>, vector<32x256xf32>
    %103 = arith.truncf %102 : vector<32x256xf32> to vector<32x256xbf16>
    %104 = vector.extract_strided_slice %81 {offsets = [0, 1], sizes = [32, 255], strides = [1, 1]} : vector<32x256xf32> to vector<32x255xf32>
    %105 = vector.extract_strided_slice %81 {offsets = [0, 0], sizes = [32, 1], strides = [1, 1]} : vector<32x256xf32> to vector<32x1xf32>
    %106 = tpu.concatenate %104, %105 in 1 : vector<32x255xf32>, vector<32x1xf32> -> vector<32x256xf32>
    %107 = vector.extract_strided_slice %81 {offsets = [0, 0], sizes = [32, 1], strides = [1, 1]} : vector<32x256xf32> to vector<32x1xf32>
    %108 = vector.extract_strided_slice %81 {offsets = [0, 0], sizes = [32, 255], strides = [1, 1]} : vector<32x256xf32> to vector<32x255xf32>
    %109 = tpu.concatenate %107, %108 in 1 : vector<32x1xf32>, vector<32x255xf32> -> vector<32x256xf32>
    %110 = arith.select %20, %106, %109 : vector<32x256xi1>, vector<32x256xf32>
    %111 = arith.truncf %110 : vector<32x256xf32> to vector<32x256xbf16>
    %112 = arith.truncf %81 : vector<32x256xf32> to vector<32x256xbf16>
    %113 = arith.select %22, %109, %106 : vector<32x256xi1>, vector<32x256xf32>
    %114 = arith.truncf %113 : vector<32x256xf32> to vector<32x256xbf16>
    %115 = tpu.concatenate %89, %90, %92, %100, %101, %103, %111, %112, %114 in 0 : vector<32x256xbf16>, vector<32x256xbf16>, vector<32x256xbf16>, vector<32x256xbf16>, vector<32x256xbf16>, vector<32x256xbf16>, vector<32x256xbf16>, vector<32x256xbf16>, vector<32x256xbf16> -> vector<288x256xbf16>
    %cst_18 = arith.constant dense<0.000000e+00> : vector<32x256xf32>
    %116 = tpu.matmul %73, %115, %cst_18 {dimension_numbers = #tpu.dot_dimension_numbers<[1], [0], [0], [1], [0, 0, 1, 1], [], []>} : vector<32x288xbf16>, vector<288x256xbf16>, vector<32x256xf32> -> vector<32x256xf32>
    %117 = vector.broadcast %75 : vector<32x1xf32> to vector<32x256xf32>
    %118 = arith.addf %116, %117 : vector<32x256xf32>
    %119 = arith.addf %118, %1 : vector<32x256xf32>
    %cst_19 = arith.constant 0.000000e+00 : f32
    %120 = vector.broadcast %cst_19 : f32 to vector<32x256xf32>
    %121 = arith.maximumf %119, %120 : vector<32x256xf32>
    %c0_20 = arith.constant 0 : index
    %c0_21 = arith.constant 0 : index
    %c0_22 = arith.constant 0 : index
    %122 = vector.load %arg4[%c0_20, %c0_21, %c0_22] : memref<1x32x256xf32, #tpu.memory_space<vmem>>, vector<1x32x256xf32>
    %123 = vector.shape_cast %122 : vector<1x32x256xf32> to vector<32x256xf32>
    %124 = vector.shape_cast %121 : vector<32x256xf32> to vector<1x32x256xf32>
    tpu.vector_store %arg4[%c0_20, %c0_21, %c0_22], %124 {strides = array<i32>} : memref<1x32x256xf32, #tpu.memory_space<vmem>>, vector<1x32x256xf32>,
    return
  }
  func.func @transform_0(%arg0: i32) -> (i32, i32, i32) {
    %c0_i32 = arith.constant 0 : i32
    %c0_i32_0 = arith.constant 0 : i32
    %c0_i32_1 = arith.constant 0 : i32
    return %arg0, %c0_i32, %c0_i32_0 : i32, i32, i32
  }
  func.func @transform_1(%arg0: i32) -> (i32, i32, i32) {
    %c0_i32 = arith.constant 0 : i32
    %c0_i32_0 = arith.constant 0 : i32
    %c0_i32_1 = arith.constant 0 : i32
    %c0_i32_2 = arith.constant 0 : i32
    return %c0_i32, %c0_i32_0, %c0_i32_1 : i32, i32, i32
  }
  func.func @transform_2(%arg0: i32) -> (i32, i32, i32) {
    %c0_i32 = arith.constant 0 : i32
    %c0_i32_0 = arith.constant 0 : i32
    %c0_i32_1 = arith.constant 0 : i32
    %c0_i32_2 = arith.constant 0 : i32
    return %c0_i32, %c0_i32_0, %c0_i32_1 : i32, i32, i32
  }
  func.func @transform_3(%arg0: i32) -> (i32, i32, i32) {
    %c0_i32 = arith.constant 0 : i32
    %c0_i32_0 = arith.constant 0 : i32
    %c0_i32_1 = arith.constant 0 : i32
    return %arg0, %c0_i32, %c0_i32_0 : i32, i32, i32
  }
}

</mosaic_0001>

<bundles_post_ra>
// kernel: residual_block_forward.1
= control target key start
LH: loop header
LB: loop body
LE: loop exit
PB: predicated region body
PF: predicated region fallthrough
CT: control target
= control target key end

     0   :  { %s1838_s12 = smov 0   ;;  %s2890_s0 = inlined_call_operand.vmem [shape: f32[2,32,256], index: 0, kind: input, shape index: {}]   ;;  %s2891_s1 = inlined_call_operand.vmem [shape: bf16[2,32,288], index: 1, kind: input, shape index: {}]   ;;  %s2892_s2 = inlined_call_operand.vmem [shape: f32[2,32,1], index: 2, kind: input, shape index: {}]   ;;  %s2893_s3 = inlined_call_operand.vmem [shape: f32[2,32,256], index: 3, kind: output, shape index: {}]  }
   0x1 LB: > { %s1405_s13 = sadd.s32 4294967295, %s1811_s12   ;;  %p1409_p0 = scmp.ge.s32.totalorder %s1811_s12, 1  ;;  %s1811_s12 = sphi %s1838_s12, %s13_s12  }
   0x2   : > { %p137_p1 = scmp.lt.s32.totalorder %s1811_s12, 3 }
   0x4   : > { %p138_p2 = pnand %p1409_p0, %p137_p1 }
   0x6   : > { %141 = sbr.rel (%p138_p2) target bundleno = 1070 (0x42e), region = 32 }
   0xb   : > { %p161_p3 = scmp.lt.s32.totalorder %s1405_s13, 1  ;;  %s1813_s18 = smov 16   ;;  %v180_v16 = vlaneseq  ;;  %vm259_vm0 = vcmask 130048   ;;  %vm284_vm1 = vcmask 916480   ;;  %vm325_vm2 = vcmask 1039360  }
   0xc   : > { %s1814_s19 = smov 112   ;;  %s1815_s20 = smov 127   ;;  %vm362_vm4 = vcmask 7168   ;;  %vm653_vm8 = vcmask 261120  }
   0xd   : > { %s2952_s13 = smov (!%p161_p3, %s1405_s13), 1  ;;  %s1816_s21 = smov 1   ;;  %v1912_v22 = vand.u32 127, %v180_v16 }
   0xe   : > { %s1444_s14 = sshll.u32 %s2952_s13, 6 }
   0xf   : > { %s1854_s17 = scalar_lea.vmem %s2890_s0, %s1444_s14  ;;  %v182_v31 = vadd.s32 128, %v1912_v22  ;;  %v187_v45 = vand.u32 15, %v1912_v22  ;;  %s2870_s22 = scalar_lea.vmem %s2893_s3, %s1444_s14 }
  0x10   : > { %v1857_v0 = vld [vmem:[%s1854_s17 + $0x30] sm:$0xff]  ;;  %v1860_v1 = vld [vmem:[%s1854_s17 + $0x38] sm:$0xff]  ;;  %v1863_v2 = vld [vmem:[%s1854_s17 + $0x20] sm:$0xff] }
  0x11   : > { %2908 = vst [vmem:[#allocation2_spill] sm:$0xff] %v1857_v0  ;;  %v1469_v3 = vpack.i.bf16 %v1860_v1, %v1857_v0  ;;  %v1459_v4 = vpack.i.bf16 %v1857_v0, %v1863_v2  ;;  %v1870_v5 = vld [vmem:[%s1854_s17 + $0x28] sm:$0xff]  ;;  %v1873_v6 = vld [vmem:[%s1854_s17] sm:$0xff]  ;;  %v1876_v7 = vld [vmem:[%s1854_s17 + $0x10] sm:$0xff]  ;;  %v194_v44 = vand.u32 15, %v182_v31  ;;  %vm1957_vm5 = vcmp.eq.s32.totalorder %v187_v45, 0 }
  0x12   : > { %2909 = vst [vmem:[#allocation3_spill] sm:$0xff] %v1873_v6  ;;  %2910 = vst [vmem:[#allocation4_spill] sm:$0xff] %v1876_v7  ;;  %v1464_v8 = vpack.i.bf16 %v1870_v5, %v1863_v2  ;;  %v1474_v9 = vpack.i.bf16 %v1876_v7, %v1873_v6  ;;  %v1885_v10 = vld [vmem:[%s1854_s17 + $0x8] sm:$0xff]  ;;  %v1888_v11 = vld [vmem:[%s1854_s17 + $0x18] sm:$0xff]  ;;  %v1489_v14 = vpack.i.bf16 %v1860_v1, %v1870_v5  ;;  %vm2012_vm7 = vcmp.eq.s32.totalorder %v187_v45, 15 }
  0x13   : > { %1470 = vrot.lane.b32.xlu1 %v1469_v3, %s1813_s18  ;;  %1460 = vrot.lane.b32.xlu0 %v1459_v4, %s1814_s19  ;;  %2911 = vst [vmem:[#allocation5_spill] sm:$0xff] %v1885_v10  ;;  %2912 = vst [vmem:[#allocation6_spill] sm:$0xff] %v1888_v11  ;;  %v1479_v12 = vpack.i.bf16 %v1885_v10, %v1873_v6  ;;  %v1484_v13 = vpack.i.bf16 %v1888_v11, %v1876_v7  ;;  %vm1953_vm3 = vcmp.eq.s32.totalorder %v194_v44, 0 }
  0x14   : > { %v1494_v15 = vpack.i.bf16 %v1888_v11, %v1885_v10  ;;  %vm1989_vm6 = vcmp.eq.s32.totalorder %v194_v44, 15 }
  0x17   : > { %1465 = vrot.lane.b32.xlu0 %v1464_v8, %s1813_s18  ;;  %1475 = vrot.lane.b32.xlu1 %v1474_v9, %s1814_s19 }
  0x1b   : > { %1480 = vrot.lane.b32.xlu0 %v1479_v12, %s1813_s18  ;;  %1485 = vrot.lane.b32.xlu1 %v1484_v13, %s1813_s18 }
  0x1f   : > { %1490 = vrot.lane.b32.xlu0 %v1489_v14, %s1814_s19  ;;  %1495 = vrot.lane.b32.xlu1 %v1494_v15, %s1814_s19  ;;  %v1789_v15 = vld [vmem:[%s2891_s1 + $0x38] ss:$12 sps:$4 sm:$0xff]  }
  0x23   : > { %1500 = vrot.lane.b32.xlu0 %v1464_v8, %s1815_s20  ;;  %1505 = vrot.lane.b32.xlu1 %v1469_v3, %s1815_s20 }
  0x27   : > { %1510 = vrot.lane.b32.xlu0 %v1464_v8, %s1816_s21  ;;  %1515 = vrot.lane.b32.xlu1 %v1469_v3, %s1816_s21 }
  0x2b   : > { %1520 = vrot.lane.b32.xlu0 %v1479_v12, %s1815_s20  ;;  %1525 = vrot.lane.b32.xlu1 %v1484_v13, %s1815_s20 }
  0x2f   : > { %1530 = vrot.lane.b32.xlu0 %v1479_v12, %s1816_s21  ;;  %1535 = vrot.lane.b32.xlu1 %v1484_v13, %s1816_s21 }
  0x85   : > { %v1471_v17 = vpop.permute.xlu1 %1470  ;;  %v1461_v18 = vpop.permute.xlu0 %1460 }
  0x86   : > { %v1473_v19 = vunpack.i.h.bf16 %v1471_v17  ;;  %v1472_v20 = vunpack.i.l.bf16 %v1471_v17  ;;  %v1463_v21 = vunpack.i.h.bf16 %v1461_v18  ;;  %v1462_v28 = vunpack.i.l.bf16 %v1461_v18 }
  0x88   : > { %v1915_v23 = vsel %vm259_vm0, %v1463_v21, %v1472_v20  ;;  %v1918_v24 = vsel %vm259_vm0, %v1472_v20, %v1473_v19 }
  0x89   : > { %v1466_v25 = vpop.permute.xlu0 %1465  ;;  %v1476_v26 = vpop.permute.xlu1 %1475  ;;  %v1544_v27 = vpack.i.bf16 %v1918_v24, %v1915_v23 }
  0x8a   : > { %v1468_v29 = vunpack.i.h.bf16 %v1466_v25  ;;  %v1467_v30 = vunpack.i.l.bf16 %v1466_v25  ;;  %v1478_v33 = vunpack.i.h.bf16 %v1476_v26  ;;  %v1477_v35 = vunpack.i.l.bf16 %v1476_v26 }
  0x8b   : > { %1545 = vrot.lane.b32.xlu1 %v1544_v27, %s1815_s20 }
  0x8c   : > { %v1925_v32 = vsel %vm259_vm0, %v1462_v28, %v1467_v30  ;;  %v1928_v34 = vsel %vm259_vm0, %v1467_v30, %v1468_v29 }
  0x8d   : > { %v1481_v36 = vpop.permute.xlu0 %1480  ;;  %v1486_v37 = vpop.permute.xlu1 %1485  ;;  %v1539_v38 = vpack.i.bf16 %v1928_v34, %v1925_v32 }
  0x8e   : > { %v1483_v40 = vunpack.i.h.bf16 %v1481_v36  ;;  %v1482_v41 = vunpack.i.l.bf16 %v1481_v36  ;;  %v1488_v42 = vunpack.i.h.bf16 %v1486_v37  ;;  %v1487_v43 = vunpack.i.l.bf16 %v1486_v37 }
  0x8f   : > { %1540 = vrot.lane.b32.xlu0 %v1539_v38, %s1815_s20  ;;  %1555 = vrot.lane.b32.xlu1 %v1544_v27, %s1816_s21 }
  0x90   : > { %v1938_v46 = vsel %vm259_vm0, %v1478_v33, %v1487_v43  ;;  %v1941_v47 = vsel %vm259_vm0, %v1487_v43, %v1488_v42  ;;  %v1944_v48 = vsel %vm259_vm0, %v1477_v35, %v1482_v41  ;;  %v1949_v52 = vsel %vm259_vm0, %v1482_v41, %v1483_v40 }
  0x91   : > { %v1491_v49 = vpop.permute.xlu0 %1490  ;;  %v1496_v50 = vpop.permute.xlu1 %1495  ;;  %v1564_v51 = vpack.i.bf16 %v1941_v47, %v1938_v46  ;;  %v1559_v62 = vpack.i.bf16 %v1949_v52, %v1944_v48 }
  0x92   : > { %v1493_v53 = vunpack.i.h.bf16 %v1491_v49  ;;  %v1492_v54 = vunpack.i.l.bf16 %v1491_v49  ;;  %v1498_v55 = vunpack.i.h.bf16 %v1496_v50  ;;  %v1497_v56 = vunpack.i.l.bf16 %v1496_v50 }
  0x93   : > { %1550 = vrot.lane.b32.xlu0 %v1539_v38, %s1816_s21  ;;  %1565 = vrot.lane.b32.xlu1 %v1564_v51, %s1815_s20 }
  0x94   : > { %v1964_v60 = vsel %vm284_vm1, %v1463_v21, %v1493_v53  ;;  %v1967_v61 = vsel %vm284_vm1, %v1462_v28, %v1492_v54  ;;  %v1972_v63 = vsel %vm284_vm1, %v1478_v33, %v1498_v55  ;;  %v1975_v3 = vsel %vm284_vm1, %v1493_v53, %v1473_v19 }
  0x95   : > { %v1978_v4 = vsel %vm284_vm1, %v1492_v54, %v1468_v29  ;;  %v1981_v8 = vsel %vm284_vm1, %v1498_v55, %v1488_v42  ;;  %v1501_v9 = vpop.permute.xlu0 %1500  ;;  %v1506_v12 = vpop.permute.xlu1 %1505  ;;  %v1984_v13 = vsel %vm284_vm1, %v1477_v35, %v1497_v56  ;;  %v1987_v14 = vsel %vm284_vm1, %v1497_v56, %v1483_v40 }
  0x96   : > { %v1584_v16 = vpack.i.bf16 %v1975_v3, %v1964_v60  ;;  %v1579_v17 = vpack.i.bf16 %v1978_v4, %v1967_v61  ;;  %v1503_v18 = vunpack.i.h.bf16 %v1501_v9  ;;  %v2001_v19 = vpack.i.bf16 %v1981_v8, %v1972_v63 }
  0x97   : > { %1575 = vrot.lane.b32.xlu1 %v1564_v51, %s1816_s21  ;;  %1560 = vrot.lane.b32.xlu0 %v1559_v62, %s1815_s20  ;;  %v1502_v20 = vunpack.i.l.bf16 %v1501_v9  ;;  %v1508_v21 = vunpack.i.h.bf16 %v1506_v12  ;;  %v1507_v22 = vunpack.i.l.bf16 %v1506_v12 }
  0x99   : > { %v1511_v25 = vpop.permute.xlu0 %1510  ;;  %v1516_v26 = vpop.permute.xlu1 %1515  ;;  %v441_v35 = vsel %vm325_vm2, %v1503_v18, %v1502_v20  ;;  %v442_v36 = vsel %vm325_vm2, %v1508_v21, %v1507_v22  ;;  %v425_v37 = vsel %vm325_vm2, %v1502_v20, %v1503_v18  ;;  %v426_v42 = vsel %vm325_vm2, %v1507_v22, %v1508_v21 }
  0x9a   : > { %v1513_v29 = vunpack.i.h.bf16 %v1511_v25  ;;  %v1512_v30 = vunpack.i.l.bf16 %v1511_v25  ;;  %v1518_v31 = vunpack.i.h.bf16 %v1516_v26  ;;  %v1517_v33 = vunpack.i.l.bf16 %v1516_v26 }
  0x9b   : > { %1585 = vrot.lane.b32.xlu1 %v1584_v16, %s1815_s20  ;;  %1570 = vrot.lane.b32.xlu0 %v1559_v62, %s1816_s21 }
  0x9c   : > { %v461_v40 = vsel %vm362_vm4, %v1512_v30, %v1513_v29  ;;  %v462_v41 = vsel %vm362_vm4, %v1517_v33, %v1518_v31  ;;  %v473_v43 = vsel %vm362_vm4, %v1863_v2, %v1512_v30  ;;  %v474_v51 = vsel %vm362_vm4, %v1857_v0, %v1517_v33 }
  0x9d   : > { %v1521_v44 = vpop.permute.xlu0 %1520  ;;  %v1526_v49 = vpop.permute.xlu1 %1525  ;;  %v480_v50 = vsel %vm1953_vm3, %v441_v35, %v461_v40  ;;  %v482_v45 = vsel %vm1953_vm3, %v442_v36, %v462_v41  ;;  %v479_v53 = vsel %vm1957_vm5, %v425_v37, %v473_v43  ;;  %v481_v12 = vsel %vm1957_vm5, %v426_v42, %v474_v51 }
  0x9e   : > { %v1523_v54 = vunpack.i.h.bf16 %v1521_v44  ;;  %v1522_v55 = vunpack.i.l.bf16 %v1521_v44  ;;  %v1528_v56 = vunpack.i.h.bf16 %v1526_v49  ;;  %v1527_v62 = vunpack.i.l.bf16 %v1526_v49 }
  0x9f   : > { %1595 = vrot.lane.b32.xlu1 %v1584_v16, %s1816_s21  ;;  %1580 = vrot.lane.b32.xlu0 %v1579_v17, %s1815_s20  ;;  %v486_v9 = vpack.c.bf16 %v482_v45, %v480_v50  ;;  %v496_v18 = vsel %vm1989_vm6, %v461_v40, %v441_v35  ;;  %v485_v29 = vpack.c.bf16 %v481_v12, %v479_v53 }
  0xa0   : > { %v423_v20 = vsel %vm325_vm2, %v1522_v55, %v1523_v54  ;;  %v439_v21 = vsel %vm325_vm2, %v1523_v54, %v1522_v55  ;;  %v424_v22 = vsel %vm325_vm2, %v1527_v62, %v1528_v56  ;;  %v440_v25 = vsel %vm325_vm2, %v1528_v56, %v1527_v62 }
  0xa1   : > { %660 = vmatprep.subr.bf16.mxu0 %v486_v9  ;;  %v1531_v26 = vpop.permute.xlu0 %1530  ;;  %v1536_v16 = vpop.permute.xlu1 %1535  ;;  %v498_v30 = vsel %vm1989_vm6, %v462_v41, %v442_v36  ;;  %v495_v31 = vsel %vm2012_vm7, %v473_v43, %v425_v37  ;;  %v497_v33 = vsel %vm2012_vm7, %v474_v51, %v426_v42  ;;  %v1599_v50 = vpack.i.bf16 %v1987_v14, %v1984_v13 }
  0xa2   : > { %v1533_v35 = vunpack.i.h.bf16 %v1531_v26  ;;  %v1532_v40 = vunpack.i.l.bf16 %v1531_v26  ;;  %v1538_v44 = vunpack.i.h.bf16 %v1536_v16  ;;  %v1537_v49 = vunpack.i.l.bf16 %v1536_v16  ;;  %661 = vmatpush1.bf16.msra.mxu0 %v485_v29  ;;  %v220_v29 = vld [vmem:[%s2892_s2 + $0x8] sm:$0xff] }
  0xa3   : > { %1605 = vrot.lane.b32.xlu1 %v2001_v19, %s1815_s20  ;;  %1590 = vrot.lane.b32.xlu0 %v1579_v17, %s1816_s21  ;;  %v2050_v45 = vpack.c.bf16 %v498_v30, %v496_v18  ;;  %v2052_v36 = vpack.c.bf16 %v497_v33, %v495_v31  ;;  %v391_v0 = vpack.c.bf16 %v1938_v46, %v1944_v48 }
  0xa4   : > { %v459_v37 = vsel %vm362_vm4, %v1532_v40, %v1533_v35  ;;  %v471_v41 = vsel %vm362_vm4, %v1873_v6, %v1532_v40  ;;  %v460_v42 = vsel %vm362_vm4, %v1537_v49, %v1538_v44  ;;  %v472_v43 = vsel %vm362_vm4, %v1876_v7, %v1537_v49 }
  0xa5   : > { %v476_v17 = vsel %vm1953_vm3, %v439_v21, %v459_v37  ;;  %v478_v51 = vsel %vm1953_vm3, %v440_v25, %v460_v42  ;;  %v475_v53 = vsel %vm1957_vm5, %v423_v20, %v471_v41  ;;  %v477_v54 = vsel %vm1957_vm5, %v424_v22, %v472_v43 }
  0xa6   : > { %v484_v55 = vpack.c.bf16 %v478_v51, %v476_v17  ;;  %v483_v56 = vpack.c.bf16 %v477_v54, %v475_v53  ;;  %v492_v62 = vsel %vm1989_vm6, %v459_v37, %v439_v21  ;;  %v494_v9 = vsel %vm1989_vm6, %v460_v42, %v440_v25  ;;  %v219_v25 = vld [vmem:[%s2892_s2] sm:$0xff] }
  0xa7   : > { %1615 = vrot.lane.b32.xlu1 %v2001_v19, %s1816_s21  ;;  %1600 = vrot.lane.b32.xlu0 %v1599_v50, %s1815_s20  ;;  %v2075_v12 = vpack.c.bf16 %v494_v9, %v492_v62  ;;  %v491_v18 = vsel %vm2012_vm7, %v471_v41, %v423_v20  ;;  %v493_v26 = vsel %vm2012_vm7, %v472_v43, %v424_v22  ;;  %v2894_v21 = vmov 0   ;;  %v1784_v19 = vld [vmem:[%s2891_s1 + $0x4] ss:$12 sps:$4 sm:$0xff]   ;;  %v222_v20 = vld [vmem:[%s2892_s2 + $0x18] sm:$0xff] }
  0xa8   : > { %662 = vmatprep.subr.bf16.mxu0 %v484_v55  ;;  %v2081_v16 = vpack.c.bf16 %v493_v26, %v491_v18  ;;  %745 = vmatprep.mubr.bf16.mxu1 %v2894_v21  ;;  %v221_v22 = vld [vmem:[%s2892_s2 + $0x10] sm:$0xff]  ;;  %v393_v6 = vpack.c.bf16 %v1915_v23, %v1925_v32 }
  0xa9   : > { %663 = vmatpush1.bf16.msra.mxu0 %v483_v56  ;;  %1620 = vset.pattern.permute.xlu1 %v2894_v21 }
  0xaa   : > { %1619 = vset.pattern.permute.xlu0 %v2894_v21  ;;  %692 = vmatprep.mubr.bf16.mxu0 %v1784_v19 }
  0xab   : > { %1610 = vrot.lane.b32.xlu0 %v1599_v50, %s1816_s21  ;;  %620 = vperm.xlu1 %1620, %v222_v20  }
  0xaf   : > { %615 = vperm.xlu0 %1619, %v221_v22   ;;  %605 = vperm.xlu1 %1620, %v219_v25  }
  0xb3   : > { %610 = vperm.xlu0 %1619, %v220_v29  }
  0xfd   : > { %v1546_v30 = vpop.permute.xlu1 %1545 }
  0xfe   : > { %v1548_v50 = vunpack.i.h.bf16 %v1546_v30  ;;  %v1547_v37 = vunpack.i.l.bf16 %v1546_v30 }
 0x100   : > { %v2123_v9 = vsel %vm325_vm2, %v1547_v37, %v1548_v50  ;;  %v2126_v18 = vsel %vm325_vm2, %v1548_v50, %v1547_v37 }
 0x101   : > { %v1541_v31 = vpop.permute.xlu0 %1540  ;;  %v1556_v33 = vpop.permute.xlu1 %1555 }
 0x102   : > { %v1558_v35 = vunpack.i.h.bf16 %v1556_v33  ;;  %v1557_v40 = vunpack.i.l.bf16 %v1556_v33  ;;  %v1543_v44 = vunpack.i.h.bf16 %v1541_v31  ;;  %v1542_v49 = vunpack.i.l.bf16 %v1541_v31 }
 0x104   : > { %v2103_v51 = vsel %vm362_vm4, %v1557_v40, %v1558_v35  ;;  %v2107_v53 = vsel %vm362_vm4, %v1915_v23, %v1557_v40  ;;  %v2110_v54 = vsel %vm325_vm2, %v1542_v49, %v1543_v44  ;;  %v2113_v55 = vsel %vm325_vm2, %v1543_v44, %v1542_v49 }
 0x105   : > { %v1551_v41 = vpop.permute.xlu0 %1550  ;;  %v1566_v42 = vpop.permute.xlu1 %1565  ;;  %v402_v25 = vsel %vm1989_vm6, %v2103_v51, %v2126_v18  ;;  %v401_v29 = vsel %vm2012_vm7, %v2107_v53, %v2123_v9 }
 0x106   : > { %v1553_v43 = vunpack.i.h.bf16 %v1551_v41  ;;  %v1552_v17 = vunpack.i.l.bf16 %v1551_v41  ;;  %v1568_v49 = vunpack.i.h.bf16 %v1566_v42  ;;  %v1567_v50 = vunpack.i.l.bf16 %v1566_v42 }
 0x108   : > { %v2116_v56 = vsel %vm362_vm4, %v1552_v17, %v1553_v43  ;;  %v2120_v62 = vsel %vm362_vm4, %v1925_v32, %v1552_v17 }
 0x109   : > { %v1576_v26 = vpop.permute.xlu1 %1575  ;;  %v1561_v19 = vpop.permute.xlu0 %1560  ;;  %v400_v20 = vsel %vm1989_vm6, %v2116_v56, %v2113_v55  ;;  %v399_v22 = vsel %vm2012_vm7, %v2120_v62, %v2110_v54  ;;  %v383_v32 = vsel %vm1957_vm5, %v2110_v54, %v2120_v62 }
 0x10a   : > { %v1578_v30 = vunpack.i.h.bf16 %v1576_v26  ;;  %v1577_v31 = vunpack.i.l.bf16 %v1576_v26  ;;  %v406_v33 = vpack.c.bf16 %v402_v25, %v400_v20  ;;  %v405_v35 = vpack.c.bf16 %v401_v29, %v399_v22 }
 0x10b   : > { %v1563_v40 = vunpack.i.h.bf16 %v1561_v19  ;;  %v1562_v44 = vunpack.i.l.bf16 %v1561_v19  ;;  %v2165_v22 = vsel %vm325_vm2, %v1567_v50, %v1568_v49  ;;  %v2168_v25 = vsel %vm325_vm2, %v1568_v49, %v1567_v50 }
 0x10c   : > { %664 = vmatprep.subr.bf16.mxu0 %v406_v33  ;;  %v2145_v28 = vsel %vm362_vm4, %v1577_v31, %v1578_v30  ;;  %v2149_v21 = vsel %vm362_vm4, %v1938_v46, %v1577_v31 }
 0x10d   : > { %v1586_v37 = vpop.permute.xlu1 %1585  ;;  %v1571_v41 = vpop.permute.xlu0 %1570  ;;  %665 = vmatpush1.bf16.msra.mxu0 %v405_v35  ;;  %v2152_v26 = vsel %vm325_vm2, %v1562_v44, %v1563_v40  ;;  %v2155_v19 = vsel %vm325_vm2, %v1563_v40, %v1562_v44  ;;  %v398_v35 = vsel %vm1989_vm6, %v2145_v28, %v2168_v25  ;;  %v397_v40 = vsel %vm2012_vm7, %v2149_v21, %v2165_v22 }
 0x10e   : > { %v1573_v43 = vunpack.i.h.bf16 %v1571_v41  ;;  %v1572_v17 = vunpack.i.l.bf16 %v1571_v41  ;;  %v1588_v27 = vunpack.i.h.bf16 %v1586_v37  ;;  %v1587_v59 = vunpack.i.l.bf16 %v1586_v37 }
 0x10f   : > { %v2921_v37 = vpack.c.bf16 %v1918_v24, %v1928_v34 }
 0x110   : > { %v2158_v42 = vsel %vm362_vm4, %v1572_v17, %v1573_v43  ;;  %v2162_v20 = vsel %vm362_vm4, %v1944_v48, %v1572_v17 }
 0x111   : > { %v1596_v29 = vpop.permute.xlu1 %1595  ;;  %v1581_v30 = vpop.permute.xlu0 %1580  ;;  %v396_v31 = vsel %vm1989_vm6, %v2158_v42, %v2155_v19  ;;  %v395_v33 = vsel %vm2012_vm7, %v2162_v20, %v2152_v26 }
 0x112   : > { %v1598_v44 = vunpack.i.h.bf16 %v1596_v29  ;;  %v1597_v49 = vunpack.i.l.bf16 %v1596_v29  ;;  %v404_v50 = vpack.c.bf16 %v398_v35, %v396_v31  ;;  %v403_v41 = vpack.c.bf16 %v397_v40, %v395_v33 }
 0x113   : > { %v1583_v43 = vunpack.i.h.bf16 %v1581_v30  ;;  %v1582_v17 = vunpack.i.l.bf16 %v1581_v30  ;;  %v386_v29 = vsel %vm1953_vm3, %v2126_v18, %v2103_v51  ;;  %v2922_v35 = vpack.c.bf16 %v1941_v47, %v1949_v52 }
 0x114   : > { %666 = vmatprep.subr.bf16.mxu0 %v404_v50  ;;  %v2198_v30 = vsel %vm362_vm4, %v1597_v49, %v1598_v44  ;;  %v2202_v23 = vsel %vm362_vm4, %v1964_v60, %v1597_v49  ;;  %v385_v50 = vsel %vm1957_vm5, %v2123_v9, %v2107_v53  ;;  %v382_v47 = vsel %vm1953_vm3, %v2168_v25, %v2145_v28 }
 0x115   : > { %v1606_v39 = vpop.permute.xlu1 %1605  ;;  %v1591_v7 = vpop.permute.xlu0 %1590  ;;  %667 = vmatpush1.bf16.msra.mxu0 %v403_v41  ;;  %v2213_v24 = vsel %vm325_vm2, %v1583_v43, %v1582_v17  ;;  %v2219_v46 = vsel %vm325_vm2, %v1582_v17, %v1583_v43  ;;  %v380_v41 = vsel %vm1953_vm3, %v2155_v19, %v2158_v42  ;;  %v389_v17 = vpack.c.bf16 %v385_v50, %v383_v32 }
 0x116   : > { %v1593_v11 = vunpack.i.h.bf16 %v1591_v7  ;;  %v1592_v10 = vunpack.i.l.bf16 %v1591_v7  ;;  %668 = vmatprep.subr.bf16.mxu0 %v2921_v37  ;;  %v384_v7 = vsel %vm1953_vm3, %v2113_v55, %v2116_v56  ;;  %v2226_v56 = vsel %vm325_vm2, %v1588_v27, %v1587_v59 }
 0x117   : > { %v598_v31 = vsel %vm1989_vm6, %v2198_v30, %v2226_v56  ;;  %v390_v43 = vpack.c.bf16 %v386_v29, %v384_v7  ;;  %v388_v29 = vpack.c.bf16 %v382_v47, %v380_v41  ;;  %v379_v28 = vsel %vm1957_vm5, %v2152_v26, %v2162_v20 }
 0x118   : > { %v2216_v34 = vsel %vm362_vm4, %v1592_v10, %v1593_v11  ;;  %v2223_v48 = vsel %vm362_vm4, %v1967_v61, %v1592_v10  ;;  %v2233_v11 = vsel %vm325_vm2, %v1587_v59, %v1588_v27  ;;  %v1608_v59 = vunpack.i.h.bf16 %v1606_v39 }
 0x119   : > { %v1616_v51 = vpop.permute.xlu1 %1615  ;;  %v1601_v55 = vpop.permute.xlu0 %1600  ;;  %v596_v54 = vsel %vm1989_vm6, %v2216_v34, %v2213_v24  ;;  %v595_v62 = vsel %vm2012_vm7, %v2223_v48, %v2219_v46  ;;  %669 = vmatpush1.bf16.msra.mxu0 %v393_v6  ;;  %v597_v33 = vsel %vm2012_vm7, %v2202_v23, %v2233_v11  ;;  %v1607_v27 = vunpack.i.l.bf16 %v1606_v39 }
 0x11a   : > { %v1618_v10 = vunpack.i.h.bf16 %v1616_v51  ;;  %v1617_v18 = vunpack.i.l.bf16 %v1616_v51  ;;  %670 = vmatprep.subr.bf16.mxu0 %v2922_v35  ;;  %v602_v40 = vpack.c.bf16 %v598_v31, %v596_v54  ;;  %v601_v44 = vpack.c.bf16 %v597_v33, %v595_v62  ;;  %v1781_v31 = vld [vmem:[%s2891_s1 + $0x8] ss:$12 sps:$4 sm:$0xff]   ;;  %v2927_v35 = vld [vmem:[#allocation5_spill] sm:$0xff] }
 0x11b   : > { %v1603_v49 = vunpack.i.h.bf16 %v1601_v55  ;;  %v1602_v6 = vunpack.i.l.bf16 %v1601_v55  ;;  %v524_v19 = vsel %vm325_vm2, %v1607_v27, %v1608_v59  ;;  %v540_v42 = vsel %vm325_vm2, %v1608_v59, %v1607_v27 }
 0x11c   : > { %725 = vmatprep.subr.bf16.mxu1 %v602_v40  ;;  %v560_v52 = vsel %vm362_vm4, %v1617_v18, %v1618_v10  ;;  %v572_v37 = vsel %vm362_vm4, %v1972_v63, %v1617_v18  ;;  %v381_v10 = vsel %vm1957_vm5, %v2165_v22, %v2149_v21  ;;  %v2923_v33 = vpack.c.bf16 %v1975_v3, %v1978_v4  ;;  %v2928_v40 = vld [vmem:[#allocation6_spill] sm:$0xff] }
 0x11d   : > { %v1611_v39 = vpop.permute.xlu0 %1610  ;;  %671 = vmatpush1.bf16.msra.mxu0 %v391_v0  ;;  %726 = vmatpush1.bf16.msra.mxu1 %v601_v44  ;;  %v523_v25 = vsel %vm325_vm2, %v1602_v6, %v1603_v49  ;;  %v539_v7 = vsel %vm325_vm2, %v1603_v49, %v1602_v6  ;;  %v594_v55 = vsel %vm1989_vm6, %v560_v52, %v540_v42  ;;  %v2924_v27 = vmov 0   ;;  %v2929_v49 = vld [vmem:[#allocation3_spill] sm:$0xff]  ;;  %v2930_v6 = vld [vmem:[#allocation4_spill] sm:$0xff] }
 0x11e   : > { %v1613_v53 = vunpack.i.h.bf16 %v1611_v39  ;;  %v1612_v9 = vunpack.i.l.bf16 %v1611_v39  ;;  %672 = vmatprep.subr.bf16.mxu0 %v390_v43  ;;  %v593_v26 = vsel %vm2012_vm7, %v572_v37, %v524_v19  ;;  %v387_v18 = vpack.c.bf16 %v381_v10, %v379_v28 }
 0x11f   : > { %v589_v59 = vpack.c.bf16 %v1964_v60, %v1967_v61  ;;  %v580_v21 = vsel %vm1953_vm3, %v2213_v24, %v2216_v34  ;;  %v2925_v22 = vpack.c.bf16 %v1981_v8, %v1987_v14  ;;  %v587_v3 = vpack.c.bf16 %v1972_v63, %v1984_v13  ;;  %v1785_v61 = vld [vmem:[%s2891_s1 + $0x20] ss:$12 sps:$4 sm:$0xff]  }
 0x120   : > { %v559_v0 = vsel %vm362_vm4, %v1612_v9, %v1613_v53  ;;  %v571_v32 = vsel %vm362_vm4, %v1984_v13, %v1612_v9  ;;  %v582_v60 = vsel %vm1953_vm3, %v2226_v56, %v2198_v30  ;;  %v579_v24 = vsel %vm1957_vm5, %v2219_v46, %v2223_v48  ;;  %v2926_v56 = vld [vmem:[#allocation2_spill] sm:$0xff] }
 0x121   : > { %v592_v51 = vsel %vm1989_vm6, %v559_v0, %v539_v7  ;;  %v591_v54 = vsel %vm2012_vm7, %v571_v32, %v523_v25  ;;  %673 = vmatpush1.bf16.msra.mxu0 %v389_v17  ;;  %v586_v4 = vpack.c.bf16 %v582_v60, %v580_v21  ;;  %v576_v8 = vsel %vm1953_vm3, %v539_v7, %v559_v0 }
 0x122   : > { %v600_v20 = vpack.c.bf16 %v594_v55, %v592_v51  ;;  %v599_v62 = vpack.c.bf16 %v593_v26, %v591_v54  ;;  %674 = vmatprep.subr.bf16.mxu0 %v388_v29  ;;  %v581_v63 = vsel %vm1957_vm5, %v2233_v11, %v2202_v23  ;;  %v578_v14 = vsel %vm1953_vm3, %v540_v42, %v560_v52 }
 0x123   : > { %v585_v13 = vpack.c.bf16 %v581_v63, %v579_v24  ;;  %v584_v30 = vpack.c.bf16 %v578_v14, %v576_v8  ;;  %v575_v34 = vsel %vm1957_vm5, %v523_v25, %v571_v32  ;;  %v577_v46 = vsel %vm1957_vm5, %v524_v19, %v572_v37 }
 0x124   : > { %727 = vmatprep.subr.bf16.mxu1 %v600_v20  ;;  %v583_v48 = vpack.c.bf16 %v577_v46, %v575_v34  ;;  %v490_v23 = vpack.c.bf16 %v1860_v1, %v1870_v5  ;;  %v489_v11 = vpack.c.bf16 %v2926_v56, %v1863_v2  ;;  %v488_v44 = vpack.c.bf16 %v2928_v40, %v2927_v35  ;;  %v1786_v1 = vld [vmem:[%s2891_s1 + $0x1c] ss:$12 sps:$4 sm:$0xff]   ;;  %v1788_v2 = vld [vmem:[%s2891_s1 + $0x18] ss:$12 sps:$4 sm:$0xff]  }
 0x125   : > { %728 = vmatpush1.bf16.msra.mxu1 %v599_v62  ;;  %675 = vmatpush1.bf16.msra.mxu0 %v387_v18 }
 0x126   : > { %676 = vmatprep.subr.bf16.mxu0 %v2923_v33 }
 0x128   : > { %1420 = vmatmul.mubr.msk.bf16.vlgmr.msra.gmra.mxu1 %vm653_vm8, %v1781_v31 }
 0x129   : > { %755 = vmatprep.mubr.bf16.mxu1 %v2924_v27  ;;  %677 = vmatpush2.bf16.msra.mxu0 %v589_v59 }
 0x12a   : > { %678 = vmatprep.subr.bf16.mxu0 %v2925_v22  ;;  %v616_v50 = vpop.permute.xlu0 %615 }
 0x12d   : > { %679 = vmatpush2.bf16.msra.mxu0 %v587_v3 }
 0x12e   : > { %680 = vmatprep.subr.bf16.mxu0 %v586_v4  ;;  %v611_v37 = vpop.permute.xlu0 %610 }
 0x130   : > { %1421 = vmatmul.mubr.msk.bf16.gmra.mxu1 %vm653_vm8, %v1785_v61 }
 0x131   : > { %681 = vmatpush2.bf16.msra.mxu0 %v585_v13 }
 0x132   : > { %682 = vmatprep.subr.bf16.mxu0 %v584_v30 }
 0x135   : > { %683 = vmatpush2.bf16.msra.mxu0 %v583_v48 }
 0x136   : > { %684 = vmatprep.subr.bf16.mxu0 %v2050_v45  ;;  %v487_v45 = vpack.c.bf16 %v2930_v6, %v2929_v49 }
 0x139   : > { %685 = vmatpush2.bf16.msra.mxu0 %v2052_v36  ;;  %v1782_v36 = vld [vmem:[%s2891_s1] ss:$12 sps:$4 sm:$0xff]  }
 0x13a   : > { %686 = vmatprep.subr.bf16.mxu0 %v2075_v12  ;;  %v621_v12 = vpop.permute.xlu1 %620 }
 0x13d   : > { %687 = vmatpush2.bf16.msra.mxu0 %v2081_v16 }
 0x13e   : > { %688 = vmatprep.subr.bf16.mxu0 %v490_v23  ;;  %v606_v39 = vpop.permute.xlu1 %605 }
 0x141   : > { %689 = vmatpush2.bf16.msra.mxu0 %v489_v11 }
 0x142   : > { %690 = vmatprep.subr.bf16.mxu0 %v488_v44 }
 0x145   : > { %691 = vmatpush2.bf16.msra.mxu0 %v487_v45 }
 0x148   : > { %693 = vmatmul.mubr.bf16.vlgmr.msra.gmra.mxu0 %v1782_v36 }
 0x149   : > { %702 = vmatprep.mubr.bf16.mxu0 %v1786_v1 }
 0x150   : > { %703 = vmatmul.mubr.bf16.gmra.mxu0 %v1788_v2 }
 0x151   : > { %1305 = vmatprep.mubr.bf16.mxu0 %v2924_v27 }
 0x1e8   : > { %v747_v5 = vpop.f32.mrf.mxu1 }
 0x1ea   : > { %v749_v16 = vpop.f32.mrf.mxu1 }
 0x1ec   : > { %v751_v41 = vpop.f32.mrf.mxu1 }
 0x1ee   : > { %v753_v17 = vpop.f32.mrf.mxu1 }
 0x1f0   : > { %v757_v19 = vpop.f32.mrf.mxu1 }
 0x1f2   : > { %v759_v32 = vpop.f32.mrf.mxu1 }
 0x1f4   : > { %v761_v21 = vpop.f32.mrf.mxu1 }
 0x1f6   : > { %v763_v14 = vpop.f32.mrf.mxu1 }
 0x208   : > { %v694_v43 = vpop.f32.mrf.mxu0 }
 0x209   : > { %v695_v47 = vadd.f32 %v694_v43, %v606_v39 }
 0x20a   : > { %v696_v52 = vpop.f32.mrf.mxu0 }
 0x20b   : > { %v697_v53 = vadd.f32 %v696_v52, %v606_v39  ;;  %v748_v42 = vadd.f32 %v747_v5, %v695_v47 }
 0x20c   : > { %v698_v9 = vpop.f32.mrf.mxu0 }
 0x20d   : > { %v699_v29 = vadd.f32 %v698_v9, %v611_v37  ;;  %v750_v0 = vadd.f32 %v749_v16, %v697_v53  ;;  %v2353_v55 = vmax.f32 %v748_v42, 0.0 }
 0x20e   : > { %v700_v28 = vpop.f32.mrf.mxu0 }
 0x20f   : > { %v752_v25 = vadd.f32 %v751_v41, %v699_v29  ;;  %v701_v7 = vadd.f32 %v700_v28, %v611_v37  ;;  %2931 = vst [vmem:[#allocation2_spill] sm:$0xff] %v2353_v55  ;;  %v2361_v59 = vmax.f32 %v750_v0, 0.0 }
 0x210   : > { %v704_v51 = vpop.f32.mrf.mxu0 }
 0x211   : > { %v2355_v54 = vmax.f32 %v752_v25, 0.0  ;;  %v754_v26 = vadd.f32 %v753_v17, %v701_v7  ;;  %v705_v20 = vadd.f32 %v704_v51, %v616_v50  ;;  %2934 = vst [vmem:[#allocation3_spill] sm:$0xff] %v2361_v59  ;;  %v1641_v44 = vpack.i.bf16 %v2361_v59, %v2353_v55 }
 0x212   : > { %v706_v62 = vpop.f32.mrf.mxu0 }
 0x213   : > { %2932 = vst [vmem:[#allocation5_spill] sm:$0xff] %v2355_v54  ;;  %v2357_v10 = vmax.f32 %v754_v26, 0.0  ;;  %v758_v18 = vadd.f32 %v757_v19, %v705_v20  ;;  %v707_v31 = vadd.f32 %v706_v62, %v616_v50  ;;  %v1621_v33 = vpack.i.bf16 %v2355_v54, %v2353_v55 }
 0x214   : > { %v708_v22 = vpop.f32.mrf.mxu0 }
 0x215   : > { %2933 = vst [vmem:[#allocation6_spill] sm:$0xff] %v2357_v10  ;;  %v760_v3 = vadd.f32 %v759_v32, %v707_v31  ;;  %v709_v60 = vadd.f32 %v708_v22, %v621_v12  ;;  %1622 = vrot.lane.b32.xlu0 %v1621_v33, %s1814_s19  ;;  %v2366_v24 = vmax.f32 %v758_v18, 0.0  ;;  %v1646_v56 = vpack.i.bf16 %v2357_v10, %v2355_v54 }
 0x216   : > { %v710_v61 = vpop.f32.mrf.mxu0  ;;  %v1651_v40 = vpack.i.bf16 %v2357_v10, %v2361_v59 }
 0x217   : > { %2935 = vst [vmem:[#allocation4_spill] sm:$0xff] %v2366_v24  ;;  %v2368_v8 = vmax.f32 %v760_v3, 0.0  ;;  %v762_v63 = vadd.f32 %v761_v21, %v709_v60  ;;  %v711_v13 = vadd.f32 %v710_v61, %v621_v12 }
 0x219   : > { %2936 = vst [vmem:[#allocation7_spill] sm:$0xff] %v2368_v8  ;;  %v2370_v30 = vmax.f32 %v762_v63, 0.0  ;;  %v764_v34 = vadd.f32 %v763_v14, %v711_v13  ;;  %v1626_v46 = vpack.i.bf16 %v2368_v8, %v2366_v24 }
 0x21b   : > { %2937 = vst [vmem:[#allocation8_spill] sm:$0xff] %v2370_v30  ;;  %v2374_v48 = vmax.f32 %v764_v34, 0.0  ;;  %1627 = vrot.lane.b32.xlu0 %v1626_v46, %s1813_s18  ;;  %v1631_v23 = vpack.i.bf16 %v2370_v30, %v2366_v24 }
 0x21c   : > { %v2946_v58 = vld [vmem:[#allocation6_spill] sm:$0xff] }
 0x21d   : > { %1632 = vrot.lane.b32.xlu1 %v1631_v23, %s1814_s19  ;;  %v1636_v35 = vpack.i.bf16 %v2374_v48, %v2370_v30  ;;  %v1656_v49 = vpack.i.bf16 %v2374_v48, %v2368_v8 }
 0x21f   : > { %1647 = vrot.lane.b32.xlu0 %v1646_v56, %s1813_s18 }
 0x220   : > { %v2942_v57 = vld [vmem:[#allocation7_spill] sm:$0xff] }
 0x221   : > { %1637 = vrot.lane.b32.xlu1 %v1636_v35, %s1813_s18 }
 0x223   : > { %1652 = vrot.lane.b32.xlu0 %v1651_v40, %s1814_s19 }
 0x225   : > { %1642 = vrot.lane.b32.xlu1 %v1641_v44, %s1813_s18 }
 0x227   : > { %1677 = vrot.lane.b32.xlu0 %v1646_v56, %s1815_s20 }
 0x229   : > { %1657 = vrot.lane.b32.xlu1 %v1656_v49, %s1814_s19 }
 0x22b   : > { %1687 = vrot.lane.b32.xlu0 %v1646_v56, %s1816_s21 }
 0x22d   : > { %1662 = vrot.lane.b32.xlu1 %v1626_v46, %s1815_s20 }
 0x22f   : > { %1692 = vrot.lane.b32.xlu0 %v1636_v35, %s1815_s20 }
 0x231   : > { %1667 = vrot.lane.b32.xlu1 %v1626_v46, %s1816_s21 }
 0x233   : > { %1697 = vrot.lane.b32.xlu0 %v1636_v35, %s1816_s21 }
 0x235   : > { %1672 = vrot.lane.b32.xlu1 %v1641_v44, %s1815_s20 }
 0x239   : > { %1682 = vrot.lane.b32.xlu1 %v1641_v44, %s1816_s21 }
 0x287   : > { %v2405_v6 = vpop.permute.xlu0 %1622 }
 0x288   : > { %v1625_v1 = vunpack.i.h.bf16 %v2405_v6  ;;  %v1624_v25 = vunpack.i.l.bf16 %v2405_v6  ;;  %v1433_v6 = vld [vmem:[%s2892_s2 + $0x38] sm:$0xff] }
 0x28d   : > { %v1628_v45 = vpop.permute.xlu0 %1627 }
 0x28e   : > { %v1630_v5 = vunpack.i.h.bf16 %v1628_v45  ;;  %v1629_v12 = vunpack.i.l.bf16 %v1628_v45 }
 0x28f   : > { %v2407_v36 = vpop.permute.xlu1 %1632 }
 0x290   : > { %v1635_v41 = vunpack.i.h.bf16 %v2407_v36  ;;  %v2428_v42 = vsel %vm259_vm0, %v1629_v12, %v1630_v5  ;;  %v1634_v7 = vunpack.i.l.bf16 %v2407_v36 }
 0x291   : > { %v1648_v2 = vpop.permute.xlu0 %1647 }
 0x292   : > { %v1650_v16 = vunpack.i.h.bf16 %v1648_v2  ;;  %v1649_v50 = vunpack.i.l.bf16 %v1648_v2  ;;  %v2450_v21 = vsel %vm259_vm0, %v1634_v7, %v1629_v12 }
 0x293   : > { %v1638_v39 = vpop.permute.xlu1 %1637  ;;  %v1711_v40 = vpack.i.bf16 %v2428_v42, %v2450_v21 }
 0x294   : > { %v2412_v43 = vsel %vm259_vm0, %v1625_v1, %v1649_v50  ;;  %v1640_v17 = vunpack.i.h.bf16 %v1638_v39  ;;  %v1639_v47 = vunpack.i.l.bf16 %v1638_v39  ;;  %v2415_v52 = vsel %vm259_vm0, %v1649_v50, %v1650_v16 }
 0x295   : > { %v2417_v37 = vpop.permute.xlu0 %1652  ;;  %v1706_v53 = vpack.i.bf16 %v2415_v52, %v2412_v43 }
 0x296   : > { %v2422_v9 = vsel %vm259_vm0, %v1635_v41, %v1639_v47  ;;  %v2425_v19 = vsel %vm259_vm0, %v1639_v47, %v1640_v17  ;;  %v1655_v20 = vunpack.i.h.bf16 %v2417_v37  ;;  %v1654_v56 = vunpack.i.l.bf16 %v2417_v37  ;;  %v1430_v37 = vld [vmem:[%s2892_s2 + $0x20] sm:$0xff] }
 0x297   : > { %v1643_v29 = vpop.permute.xlu1 %1642  ;;  %1707 = vrot.lane.b32.xlu0 %v1706_v53, %s1815_s20  ;;  %v1726_v26 = vpack.i.bf16 %v2425_v19, %v2422_v9 }
 0x298   : > { %v1645_v0 = vunpack.i.h.bf16 %v1643_v29  ;;  %v1644_v32 = vunpack.i.l.bf16 %v1643_v29  ;;  %v2456_v14 = vsel %vm284_vm1, %v1625_v1, %v1655_v20  ;;  %v2459_v23 = vsel %vm284_vm1, %v1655_v20, %v1650_v16 }
 0x299   : > { %v1678_v51 = vpop.permute.xlu0 %1677  ;;  %v2480_v16 = vpack.i.bf16 %v2459_v23, %v2456_v14 }
 0x29a   : > { %v2441_v62 = vsel %vm259_vm0, %v1624_v25, %v1644_v32  ;;  %v2444_v18 = vsel %vm259_vm0, %v1644_v32, %v1645_v0  ;;  %v1680_v60 = vunpack.i.h.bf16 %v1678_v51  ;;  %v1679_v61 = vunpack.i.l.bf16 %v1678_v51 }
 0x29b   : > { %v1658_v31 = vpop.permute.xlu1 %1657  ;;  %1727 = vrot.lane.b32.xlu0 %v1726_v26, %s1815_s20  ;;  %v1701_v33 = vpack.i.bf16 %v2444_v18, %v2441_v62 }
 0x29c   : > { %v1660_v22 = vunpack.i.h.bf16 %v1658_v31  ;;  %v1659_v3 = vunpack.i.l.bf16 %v1658_v31  ;;  %v2472_v1 = vsel %vm325_vm2, %v1679_v61, %v1680_v60  ;;  %v2483_v50 = vsel %vm325_vm2, %v1680_v60, %v1679_v61 }
 0x29d   : > { %v1688_v63 = vpop.permute.xlu0 %1687  ;;  %1702 = vrot.lane.b32.xlu1 %v1701_v33, %s1815_s20 }
 0x29e   : > { %v1690_v34 = vunpack.i.h.bf16 %v1688_v63  ;;  %v1689_v46 = vunpack.i.l.bf16 %v1688_v63  ;;  %v2466_v45 = vsel %vm284_vm1, %v1660_v22, %v1640_v17  ;;  %v2469_v36 = vsel %vm284_vm1, %v1659_v3, %v1630_v5 }
 0x29f   : > { %v1663_v35 = vpop.permute.xlu1 %1662  ;;  %1732 = vrot.lane.b32.xlu0 %v1726_v26, %s1816_s21  ;;  %v2475_v2 = vsel %vm284_vm1, %v1635_v41, %v1660_v22  ;;  %v2495_v41 = vsel %vm284_vm1, %v1654_v56, %v1645_v0  ;;  %v2498_v17 = vsel %vm284_vm1, %v1634_v7, %v1659_v3  ;;  %v2940_v38 = vpack.c.bf16 %v2466_v45, %v2469_v36 }
 0x2a0   : > { %v1665_v44 = vunpack.i.h.bf16 %v1663_v35  ;;  %v1664_v49 = vunpack.i.l.bf16 %v1663_v35  ;;  %v2486_v39 = vsel %vm362_vm4, %v1689_v46, %v1690_v34  ;;  %v2490_v5 = vsel %vm362_vm4, %v2355_v54, %v1689_v46 }
 0x2a1   : > { %v1693_v12 = vpop.permute.xlu0 %1692  ;;  %1712 = vrot.lane.b32.xlu1 %v1711_v40, %s1815_s20  ;;  %v1766_v22 = vpack.i.bf16 %v2466_v45, %v2475_v2  ;;  %v1054_v3 = vsel %vm2012_vm7, %v2490_v5, %v2472_v1 }
 0x2a2   : > { %v1695_v47 = vunpack.i.h.bf16 %v1693_v12  ;;  %v1694_v29 = vunpack.i.l.bf16 %v1693_v12  ;;  %v986_v26 = vsel %vm325_vm2, %v1664_v49, %v1665_v44  ;;  %v1002_v0 = vsel %vm325_vm2, %v1665_v44, %v1664_v49 }
 0x2a3   : > { %v1668_v32 = vpop.permute.xlu1 %1667  ;;  %1737 = vrot.lane.b32.xlu0 %v1706_v53, %s1816_s21  ;;  %v1055_v53 = vsel %vm1989_vm6, %v2486_v39, %v2483_v50 }
 0x2a4   : > { %v1670_v20 = vunpack.i.h.bf16 %v1668_v32  ;;  %v1669_v31 = vunpack.i.l.bf16 %v1668_v32  ;;  %v987_v35 = vsel %vm325_vm2, %v1694_v29, %v1695_v47 }
 0x2a5   : > { %v1698_v60 = vpop.permute.xlu0 %1697  ;;  %1717 = vrot.lane.b32.xlu1 %v1711_v40, %s1816_s21  ;;  %v1003_v40 = vsel %vm325_vm2, %v1695_v47, %v1694_v29 }
 0x2a6   : > { %v1022_v61 = vsel %vm362_vm4, %v1669_v31, %v1670_v20  ;;  %v1034_v63 = vsel %vm362_vm4, %v2366_v24, %v1669_v31  ;;  %v1700_v34 = vunpack.i.h.bf16 %v1698_v60  ;;  %v1699_v46 = vunpack.i.l.bf16 %v1698_v60 }
 0x2a7   : > { %v1673_v44 = vpop.permute.xlu1 %1672  ;;  %1757 = vrot.lane.b32.xlu0 %v2480_v16, %s1815_s20  ;;  %v1057_v49 = vsel %vm1989_vm6, %v1022_v61, %v1002_v0  ;;  %v1056_v12 = vsel %vm2012_vm7, %v1034_v63, %v986_v26  ;;  %v1041_v31 = vsel %vm1953_vm3, %v1002_v0, %v1022_v61  ;;  %v1040_v47 = vsel %vm1957_vm5, %v986_v26, %v1034_v63 }
 0x2a8   : > { %v1023_v32 = vsel %vm362_vm4, %v1699_v46, %v1700_v34  ;;  %v1035_v20 = vsel %vm362_vm4, %v2370_v30, %v1699_v46  ;;  %v1675_v4 = vunpack.i.h.bf16 %v1673_v44  ;;  %v1674_v11 = vunpack.i.l.bf16 %v1673_v44 }
 0x2a9   : > { %1722 = vrot.lane.b32.xlu1 %v1701_v33, %s1816_s21  ;;  %v1043_v29 = vsel %vm1953_vm3, %v1003_v40, %v1023_v32  ;;  %v1042_v60 = vsel %vm1957_vm5, %v987_v35, %v1035_v20  ;;  %v1059_v34 = vsel %vm1989_vm6, %v1023_v32, %v1003_v40  ;;  %v1058_v46 = vsel %vm2012_vm7, %v1035_v20, %v987_v35 }
 0x2aa   : > { %v1047_v0 = vpack.c.bf16 %v1043_v29, %v1041_v31  ;;  %v1046_v61 = vpack.c.bf16 %v1042_v60, %v1040_v47  ;;  %v1741_v33 = vpack.i.bf16 %v2469_v36, %v2498_v17  ;;  %v2548_v26 = vpack.c.bf16 %v1059_v34, %v1057_v49 }
 0x2ab   : > { %v1683_v7 = vpop.permute.xlu1 %1682  ;;  %1767 = vrot.lane.b32.xlu0 %v1766_v22, %s1815_s20  ;;  %v2550_v63 = vpack.c.bf16 %v1058_v46, %v1056_v12  ;;  %v1039_v35 = vsel %vm1953_vm3, %v2483_v50, %v2486_v39  ;;  %v1038_v40 = vsel %vm1957_vm5, %v2472_v1, %v2490_v5  ;;  %v984_v44 = vsel %vm325_vm2, %v1674_v11, %v1675_v4 }
 0x2ac   : > { %v1685_v51 = vunpack.i.h.bf16 %v1683_v7  ;;  %v1684_v13 = vunpack.i.l.bf16 %v1683_v7  ;;  %1220 = vmatprep.subr.bf16.mxu1 %v1047_v0  ;;  %v1000_v49 = vsel %vm325_vm2, %v1675_v4, %v1674_v11  ;;  %v954_v24 = vpack.c.bf16 %v2422_v9, %v2450_v21 }
 0x2ad   : > { %1221 = vmatpush1.bf16.msra.mxu1 %v1046_v61  ;;  %1742 = vrot.lane.b32.xlu1 %v1741_v33, %s1815_s20 }
 0x2ae   : > { %v1020_v7 = vsel %vm362_vm4, %v1684_v13, %v1685_v51  ;;  %v1032_v12 = vsel %vm362_vm4, %v2353_v55, %v1684_v13  ;;  %v2585_v13 = vsel %vm284_vm1, %v1624_v25, %v1654_v56  ;;  %v1432_v25 = vld [vmem:[%s2892_s2 + $0x30] sm:$0xff] }
 0x2af   : > { %1772 = vrot.lane.b32.xlu0 %v1766_v22, %s1816_s21  ;;  %v1037_v32 = vsel %vm1953_vm3, %v1000_v49, %v1020_v7  ;;  %v1036_v50 = vsel %vm1957_vm5, %v984_v44, %v1032_v12  ;;  %v1053_v1 = vsel %vm1989_vm6, %v1020_v7, %v1000_v49  ;;  %v1052_v39 = vsel %vm2012_vm7, %v1032_v12, %v984_v44  ;;  %v1792_v56 = vld [vmem:[%s2891_s1 + $0x34] ss:$12 sps:$4 sm:$0xff]  }
 0x2b0   : > { %v1045_v4 = vpack.c.bf16 %v1039_v35, %v1037_v32  ;;  %v1044_v11 = vpack.c.bf16 %v1038_v40, %v1036_v50  ;;  %v2575_v5 = vpack.c.bf16 %v1055_v53, %v1053_v1  ;;  %v2577_v51 = vpack.c.bf16 %v1054_v3, %v1052_v39  ;;  %v1431_v53 = vld [vmem:[%s2892_s2 + $0x28] sm:$0xff]  ;;  %1252 = vmatprep.mubr.bf16.mxu1 %v1792_v56 }
 0x2b1   : > { %1747 = vrot.lane.b32.xlu1 %v1741_v33, %s1816_s21  ;;  %v1751_v22 = vpack.i.bf16 %v2495_v41, %v2585_v13  ;;  %v1148_v45 = vpack.c.bf16 %v2456_v14, %v2585_v13 }
 0x2b2   : > { %1222 = vmatprep.subr.bf16.mxu1 %v1045_v4 }
 0x2b3   : > { %1223 = vmatpush1.bf16.msra.mxu1 %v1044_v11  ;;  %1777 = vrot.lane.b32.xlu0 %v2480_v16, %s1816_s21 }
 0x2b5   : > { %1752 = vrot.lane.b32.xlu1 %v1751_v22, %s1815_s20 }
 0x2b7   : > { %1171 = vperm.xlu0 %1619, %v1431_v53  }
 0x2b9   : > { %1762 = vrot.lane.b32.xlu1 %v1751_v22, %s1816_s21 }
 0x2bb   : > { %1181 = vperm.xlu0 %1619, %v1433_v6  }
 0x2bd   : > { %1166 = vperm.xlu1 %1620, %v1430_v37  }
 0x2c1   : > { %1176 = vperm.xlu1 %1620, %v1432_v25  }
 0x309   : > { %v1708_v16 = vpop.permute.xlu0 %1707 }
 0x30a   : > { %v1710_v61 = vunpack.i.h.bf16 %v1708_v16  ;;  %v1709_v33 = vunpack.i.l.bf16 %v1708_v16 }
 0x30d   : > { %v1728_v3 = vpop.permute.xlu0 %1727 }
 0x30e   : > { %v1730_v35 = vunpack.i.h.bf16 %v1728_v3  ;;  %v1729_v40 = vunpack.i.l.bf16 %v1728_v3 }
 0x30f   : > { %v1703_v20 = vpop.permute.xlu1 %1702 }
 0x310   : > { %v1705_v49 = vunpack.i.h.bf16 %v1703_v20  ;;  %v1704_v7 = vunpack.i.l.bf16 %v1703_v20  ;;  %v2631_v25 = vsel %vm325_vm2, %v1729_v40, %v1730_v35  ;;  %v2634_v56 = vsel %vm325_vm2, %v1730_v35, %v1729_v40 }
 0x311   : > { %v1733_v31 = vpop.permute.xlu0 %1732 }
 0x312   : > { %v1735_v29 = vunpack.i.h.bf16 %v1733_v31  ;;  %v1734_v60 = vunpack.i.l.bf16 %v1733_v31 }
 0x313   : > { %v1713_v47 = vpop.permute.xlu1 %1712 }
 0x314   : > { %v1715_v46 = vunpack.i.h.bf16 %v1713_v47  ;;  %v1714_v0 = vunpack.i.l.bf16 %v1713_v47  ;;  %v2609_v50 = vsel %vm362_vm4, %v1734_v60, %v1735_v29  ;;  %v2613_v1 = vsel %vm362_vm4, %v2422_v9, %v1734_v60 }
 0x315   : > { %v1738_v34 = vpop.permute.xlu0 %1737  ;;  %v963_v29 = vsel %vm1989_vm6, %v2609_v50, %v2634_v56  ;;  %v962_v60 = vsel %vm2012_vm7, %v2613_v1, %v2631_v25 }
 0x316   : > { %v1740_v39 = vunpack.i.h.bf16 %v1738_v34  ;;  %v1739_v4 = vunpack.i.l.bf16 %v1738_v34  ;;  %v2618_v22 = vsel %vm325_vm2, %v1714_v0, %v1715_v46  ;;  %v2621_v53 = vsel %vm325_vm2, %v1715_v46, %v1714_v0 }
 0x317   : > { %v1718_v44 = vpop.permute.xlu1 %1717 }
 0x318   : > { %v1720_v12 = vunpack.i.h.bf16 %v1718_v44  ;;  %v1719_v32 = vunpack.i.l.bf16 %v1718_v44  ;;  %v2653_v34 = vsel %vm362_vm4, %v1739_v4, %v1740_v39  ;;  %v2657_v46 = vsel %vm362_vm4, %v2412_v43, %v1739_v4 }
 0x319   : > { %v2615_v11 = vpop.permute.xlu0 %1757  ;;  %v2660_v44 = vsel %vm325_vm2, %v1704_v7, %v1705_v49  ;;  %v2676_v4 = vsel %vm325_vm2, %v1710_v61, %v1709_v33 }
 0x31a   : > { %v2624_v6 = vsel %vm362_vm4, %v1719_v32, %v1720_v12  ;;  %v2628_v37 = vsel %vm362_vm4, %v2450_v21, %v1719_v32  ;;  %v2663_v12 = vsel %vm325_vm2, %v1705_v49, %v1704_v7  ;;  %v1760_v59 = vunpack.i.h.bf16 %v2615_v11 }
 0x31b   : > { %v1723_v16 = vpop.permute.xlu1 %1722  ;;  %v961_v3 = vsel %vm1989_vm6, %v2624_v6, %v2621_v53  ;;  %v960_v20 = vsel %vm2012_vm7, %v2628_v37, %v2618_v22  ;;  %v1759_v8 = vunpack.i.l.bf16 %v2615_v11 }
 0x31c   : > { %v1725_v31 = vunpack.i.h.bf16 %v1723_v16  ;;  %v1724_v47 = vunpack.i.l.bf16 %v1723_v16  ;;  %v967_v35 = vpack.c.bf16 %v963_v29, %v961_v3  ;;  %v966_v40 = vpack.c.bf16 %v962_v60, %v960_v20 }
 0x31d   : > { %v1768_v0 = vpop.permute.xlu0 %1767  ;;  %v2673_v16 = vsel %vm325_vm2, %v1709_v33, %v1710_v61  ;;  %v959_v20 = vsel %vm1989_vm6, %v2653_v34, %v2676_v4 }
 0x31e   : > { %v2666_v32 = vsel %vm362_vm4, %v1724_v47, %v1725_v31  ;;  %v2670_v39 = vsel %vm362_vm4, %v2441_v62, %v1724_v47  ;;  %1224 = vmatprep.subr.bf16.mxu1 %v967_v35  ;;  %v958_v61 = vsel %vm2012_vm7, %v2657_v46, %v2673_v16  ;;  %v1770_v54 = vunpack.i.h.bf16 %v1768_v0 }
 0x31f   : > { %v1743_v3 = vpop.permute.xlu1 %1742  ;;  %v957_v49 = vsel %vm1989_vm6, %v2666_v32, %v2663_v12  ;;  %v956_v7 = vsel %vm2012_vm7, %v2670_v39, %v2660_v44  ;;  %1225 = vmatpush1.bf16.msra.mxu1 %v966_v40  ;;  %v1769_v55 = vunpack.i.l.bf16 %v1768_v0  ;;  %v2938_v0 = vpack.c.bf16 %v2425_v19, %v2428_v42 }
 0x320   : > { %v965_v31 = vpack.c.bf16 %v959_v20, %v957_v49  ;;  %v964_v47 = vpack.c.bf16 %v958_v61, %v956_v7  ;;  %v1745_v29 = vunpack.i.h.bf16 %v1743_v3  ;;  %v1744_v60 = vunpack.i.l.bf16 %v1743_v3 }
 0x321   : > { %v1773_v33 = vpop.permute.xlu0 %1772  ;;  %v945_v20 = vsel %vm1953_vm3, %v2621_v53, %v2624_v6  ;;  %v2726_v19 = vsel %vm325_vm2, %v1769_v55, %v1770_v54  ;;  %v2729_v42 = vsel %vm325_vm2, %v1770_v54, %v1769_v55 }
 0x322   : > { %v1775_v35 = vunpack.i.h.bf16 %v1773_v33  ;;  %v1774_v28 = vunpack.i.l.bf16 %v1773_v33  ;;  %1226 = vmatprep.subr.bf16.mxu1 %v965_v31  ;;  %v2713_v9 = vsel %vm325_vm2, %v1744_v60, %v1745_v29  ;;  %v2716_v21 = vsel %vm325_vm2, %v1745_v29, %v1744_v60 }
 0x323   : > { %v1748_v40 = vpop.permute.xlu1 %1747  ;;  %1227 = vmatpush1.bf16.msra.mxu1 %v964_v47  ;;  %v2939_v33 = vpack.c.bf16 %v2415_v52, %v2444_v18  ;;  %v952_v47 = vpack.c.bf16 %v2412_v43, %v2441_v62  ;;  %v941_v52 = vsel %vm1953_vm3, %v2663_v12, %v2666_v32  ;;  %v1085_v43 = vsel %vm325_vm2, %v1759_v8, %v1760_v59 }
 0x324   : > { %v1750_v10 = vunpack.i.h.bf16 %v1748_v40  ;;  %v1749_v30 = vunpack.i.l.bf16 %v1748_v40  ;;  %v2699_v49 = vsel %vm362_vm4, %v1774_v28, %v1775_v35  ;;  %v2703_v3 = vsel %vm362_vm4, %v2475_v2, %v1774_v28  ;;  %1228 = vmatprep.subr.bf16.mxu1 %v2938_v0 }
 0x325   : > { %v1778_v7 = vpop.permute.xlu0 %1777  ;;  %v1159_v55 = vsel %vm1989_vm6, %v2699_v49, %v2729_v42  ;;  %v1158_v54 = vsel %vm2012_vm7, %v2703_v3, %v2726_v19  ;;  %v944_v40 = vsel %vm1957_vm5, %v2618_v22, %v2628_v37  ;;  %v943_v22 = vsel %vm1953_vm3, %v2676_v4, %v2653_v34 }
 0x326   : > { %v2719_v11 = vsel %vm362_vm4, %v1749_v30, %v1750_v10  ;;  %v2723_v28 = vsel %vm362_vm4, %v2498_v17, %v1749_v30  ;;  %v1780_v61 = vunpack.i.h.bf16 %v1778_v7  ;;  %v1779_v30 = vunpack.i.l.bf16 %v1778_v7 }
 0x327   : > { %v1753_v53 = vpop.permute.xlu1 %1752  ;;  %v1157_v6 = vsel %vm1989_vm6, %v2719_v11, %v2716_v21  ;;  %v1156_v10 = vsel %vm2012_vm7, %v2723_v28, %v2713_v9  ;;  %1229 = vmatpush1.bf16.msra.mxu1 %v954_v24  ;;  %v947_v24 = vsel %vm1953_vm3, %v2634_v56, %v2609_v50  ;;  %v946_v50 = vsel %vm1957_vm5, %v2631_v25, %v2613_v1 }
 0x328   : > { %1230 = vmatprep.subr.bf16.mxu1 %v2939_v33  ;;  %v1163_v31 = vpack.c.bf16 %v1159_v55, %v1157_v6  ;;  %v1162_v29 = vpack.c.bf16 %v1158_v54, %v1156_v10  ;;  %v1755_v60 = vunpack.i.h.bf16 %v1753_v53  ;;  %v1754_v35 = vunpack.i.l.bf16 %v1753_v53  ;;  %v2947_v54 = vld [vmem:[#allocation3_spill] sm:$0xff] }
 0x329   : > { %v951_v18 = vpack.c.bf16 %v947_v24, %v945_v20  ;;  %v1121_v37 = vsel %vm362_vm4, %v1779_v30, %v1780_v61  ;;  %v1133_v56 = vsel %vm362_vm4, %v2456_v14, %v1779_v30  ;;  %v1101_v0 = vsel %vm325_vm2, %v1760_v59, %v1759_v8 }
 0x32a   : > { %1285 = vmatprep.subr.bf16.mxu0 %v1163_v31  ;;  %v950_v7 = vpack.c.bf16 %v946_v50, %v944_v40  ;;  %v949_v20 = vpack.c.bf16 %v943_v22, %v941_v52  ;;  %v940_v1 = vsel %vm1957_vm5, %v2660_v44, %v2670_v39  ;;  %v1084_v25 = vsel %vm325_vm2, %v1754_v35, %v1755_v60  ;;  %v2949_v31 = vld [vmem:[#allocation2_spill] sm:$0xff] }
 0x32b   : > { %v1763_v62 = vpop.permute.xlu1 %1762  ;;  %1231 = vmatpush1.bf16.msra.mxu1 %v952_v47  ;;  %1286 = vmatpush1.bf16.msra.mxu0 %v1162_v29  ;;  %v1100_v34 = vsel %vm325_vm2, %v1755_v60, %v1754_v35  ;;  %v1155_v8 = vsel %vm1989_vm6, %v1121_v37, %v1101_v0  ;;  %v1154_v44 = vsel %vm2012_vm7, %v1133_v56, %v1085_v43 }
 0x32c   : > { %v1765_v12 = vunpack.i.h.bf16 %v1763_v62  ;;  %v1764_v32 = vunpack.i.l.bf16 %v1763_v62  ;;  %1232 = vmatprep.subr.bf16.mxu1 %v951_v18  ;;  %v942_v61 = vsel %vm1957_vm5, %v2673_v16, %v2657_v46  ;;  %v1150_v55 = vpack.c.bf16 %v2475_v2, %v2498_v17 }
 0x32d   : > { %v948_v30 = vpack.c.bf16 %v942_v61, %v940_v1  ;;  %v1141_v46 = vsel %vm1953_vm3, %v2716_v21, %v2719_v11  ;;  %v2941_v16 = vpack.c.bf16 %v2459_v23, %v2495_v41  ;;  %v1143_v36 = vsel %vm1953_vm3, %v2729_v42, %v2699_v49 }
 0x32e   : > { %v1120_v4 = vsel %vm362_vm4, %v1764_v32, %v1765_v12  ;;  %v1132_v53 = vsel %vm362_vm4, %v2585_v13, %v1764_v32  ;;  %v1147_v2 = vpack.c.bf16 %v1143_v36, %v1141_v46  ;;  %v1140_v17 = vsel %vm1957_vm5, %v2713_v9, %v2723_v28  ;;  %v2944_v28 = vld [vmem:[#allocation4_spill] sm:$0xff] }
 0x32f   : > { %v1153_v59 = vsel %vm1989_vm6, %v1120_v4, %v1100_v34  ;;  %v1152_v6 = vsel %vm2012_vm7, %v1132_v53, %v1084_v25  ;;  %1233 = vmatpush1.bf16.msra.mxu1 %v950_v7  ;;  %v1137_v23 = vsel %vm1953_vm3, %v1100_v34, %v1120_v4  ;;  %v1142_v14 = vsel %vm1957_vm5, %v2726_v19, %v2703_v3  ;;  %v2945_v19 = vld [vmem:[#allocation8_spill] sm:$0xff] }
 0x330   : > { %v1161_v39 = vpack.c.bf16 %v1155_v8, %v1153_v59  ;;  %v1160_v10 = vpack.c.bf16 %v1154_v44, %v1152_v6  ;;  %1234 = vmatprep.subr.bf16.mxu1 %v949_v20  ;;  %v1146_v41 = vpack.c.bf16 %v1142_v14, %v1140_v17  ;;  %v1139_v13 = vsel %vm1953_vm3, %v1101_v0, %v1121_v37  ;;  %v1799_v44 = vld [vmem:[%s1854_s17 + $0x10] sm:$0xff]  ;;  %v1801_v17 = vld [vmem:[%s1854_s17 + $0x20] sm:$0xff] }
 0x331   : > { %v1145_v49 = vpack.c.bf16 %v1139_v13, %v1137_v23  ;;  %v1136_v9 = vsel %vm1957_vm5, %v1084_v25, %v1132_v53  ;;  %v1138_v21 = vsel %vm1957_vm5, %v1085_v43, %v1133_v56  ;;  %v2943_v3 = vpack.c.bf16 %v2374_v48, %v2942_v57  ;;  %v1794_v48 = vld [vmem:[%s2891_s1 + $0x4c] ss:$12 sps:$4 sm:$0xff]   ;;  %v1797_v56 = vld [vmem:[%s1854_s17] sm:$0xff] }
 0x332   : > { %1287 = vmatprep.subr.bf16.mxu0 %v1161_v39  ;;  %v1144_v11 = vpack.c.bf16 %v1138_v21, %v1136_v9  ;;  %v1050_v42 = vpack.c.bf16 %v2945_v19, %v2944_v28  ;;  %v2948_v33 = vpack.c.bf16 %v2946_v58, %v2947_v54  ;;  %v1172_v62 = vpop.permute.xlu0 %1171  ;;  %v1798_v25 = vld [vmem:[%s1854_s17 + $0x8] sm:$0xff]  ;;  %v1803_v19 = vld [vmem:[%s1854_s17 + $0x30] sm:$0xff] }
 0x333   : > { %1288 = vmatpush1.bf16.msra.mxu0 %v1160_v10  ;;  %1235 = vmatpush1.bf16.msra.mxu1 %v948_v30  ;;  %v1802_v9 = vld [vmem:[%s1854_s17 + $0x28] sm:$0xff] }
 0x334   : > { %1236 = vmatprep.subr.bf16.mxu1 %v2940_v38 }
 0x336   : > { %1440 = vmatmul.mubr.msk.bf16.vlgmr.msra.gmra.mxu0 %vm653_vm8, %v1789_v15  ;;  %v1182_v15 = vpop.permute.xlu0 %1181 }
 0x337   : > { %1315 = vmatprep.mubr.bf16.mxu0 %v2924_v27  ;;  %1237 = vmatpush2.bf16.msra.mxu1 %v1150_v55  ;;  %v1793_v27 = vld [vmem:[%s2891_s1 + $0x50] ss:$12 sps:$4 sm:$0xff]  }
 0x338   : > { %1238 = vmatprep.subr.bf16.mxu1 %v2941_v16  ;;  %v1167_v60 = vpop.permute.xlu1 %1166  ;;  %v1800_v55 = vld [vmem:[%s1854_s17 + $0x18] sm:$0xff] }
 0x33b   : > { %1239 = vmatpush2.bf16.msra.mxu1 %v1148_v45 }
 0x33c   : > { %1240 = vmatprep.subr.bf16.mxu1 %v1147_v2  ;;  %v1177_v20 = vpop.permute.xlu1 %1176 }
 0x33e   : > { %1441 = vmatmul.mubr.msk.bf16.gmra.mxu0 %vm653_vm8, %v1793_v27 }
 0x33f   : > { %1241 = vmatpush2.bf16.msra.mxu1 %v1146_v41 }
 0x340   : > { %1242 = vmatprep.subr.bf16.mxu1 %v1145_v49 }
 0x343   : > { %1243 = vmatpush2.bf16.msra.mxu1 %v1144_v11 }
 0x344   : > { %1244 = vmatprep.subr.bf16.mxu1 %v2548_v26  ;;  %v2950_v26 = vld [vmem:[#allocation5_spill] sm:$0xff] }
 0x345   : > { %v1048_v47 = vpack.c.bf16 %v2950_v26, %v2949_v31 }
 0x347   : > { %1245 = vmatpush2.bf16.msra.mxu1 %v2550_v63  ;;  %v1790_v63 = vld [vmem:[%s2891_s1 + $0x30] ss:$12 sps:$4 sm:$0xff]  }
 0x348   : > { %1246 = vmatprep.subr.bf16.mxu1 %v2575_v5  ;;  %v1796_v5 = vld [vmem:[%s2891_s1 + $0x48] ss:$12 sps:$4 sm:$0xff]  }
 0x34b   : > { %1247 = vmatpush2.bf16.msra.mxu1 %v2577_v51 }
 0x34c   : > { %1248 = vmatprep.subr.bf16.mxu1 %v2943_v3 }
 0x34f   : > { %1249 = vmatpush2.bf16.msra.mxu1 %v1050_v42 }
 0x350   : > { %1250 = vmatprep.subr.bf16.mxu1 %v2948_v33  ;;  %v1804_v33 = vld [vmem:[%s1854_s17 + $0x38] sm:$0xff] }
 0x353   : > { %1251 = vmatpush2.bf16.msra.mxu1 %v1048_v47 }
 0x356   : > { %1253 = vmatmul.mubr.bf16.vlgmr.msra.gmra.mxu1 %v1790_v63 }
 0x357   : > { %1262 = vmatprep.mubr.bf16.mxu1 %v1794_v48 }
 0x35e   : > { %1263 = vmatmul.mubr.bf16.gmra.mxu1 %v1796_v5 }
 0x3f6   : > { %v1307_v51 = vpop.f32.mrf.mxu0 }
 0x3f8   : > { %v1309_v29 = vpop.f32.mrf.mxu0 }
 0x3fa   : > { %v1311_v24 = vpop.f32.mrf.mxu0 }
 0x3fc   : > { %v1313_v40 = vpop.f32.mrf.mxu0 }
 0x3fe   : > { %v1317_v37 = vpop.f32.mrf.mxu0 }
 0x400   : > { %v1319_v59 = vpop.f32.mrf.mxu0 }
 0x402   : > { %v1321_v36 = vpop.f32.mrf.mxu0 }
 0x404   : > { %v1323_v3 = vpop.f32.mrf.mxu0 }
 0x416   : > { %v1254_v35 = vpop.f32.mrf.mxu1 }
 0x417   : > { %v1255_v52 = vadd.f32 %v1254_v35, %v1167_v60 }
 0x418   : > { %v1256_v43 = vpop.f32.mrf.mxu1 }
 0x419   : > { %v1308_v18 = vadd.f32 %v1307_v51, %v1255_v52  ;;  %v1257_v50 = vadd.f32 %v1256_v43, %v1167_v60 }
 0x41a   : > { %v1258_v22 = vpop.f32.mrf.mxu1 }
 0x41b   : > { %v1326_v12 = vadd.f32 %v1797_v56, %v1308_v18  ;;  %v1310_v32 = vadd.f32 %v1309_v29, %v1257_v50  ;;  %v1259_v0 = vadd.f32 %v1258_v22, %v1172_v62 }
 0x41c   : > { %v1260_v7 = vpop.f32.mrf.mxu1 }
 0x41d   : > { %v1334_v1 = vmax.f32 %v1326_v12, 0.0  ;;  %v1327_v34 = vadd.f32 %v1798_v25, %v1310_v32  ;;  %v1312_v4 = vadd.f32 %v1311_v24, %v1259_v0  ;;  %v1261_v53 = vadd.f32 %v1260_v7, %v1172_v62 }
 0x41e   : > { %v1264_v8 = vpop.f32.mrf.mxu1 }
 0x41f   : > { %1342 = vst [vmem:[%s2870_s22] sm:$0xff] %v1334_v1  ;;  %v1335_v6 = vmax.f32 %v1327_v34, 0.0  ;;  %v1328_v39 = vadd.f32 %v1799_v44, %v1312_v4  ;;  %v1314_v10 = vadd.f32 %v1313_v40, %v1261_v53  ;;  %v1265_v61 = vadd.f32 %v1264_v8, %v1177_v20 }
 0x420   : > { %v1266_v30 = vpop.f32.mrf.mxu1 }
 0x421   : > { %1343 = vst [vmem:[%s2870_s22 + $0x8] sm:$0xff] %v1335_v6  ;;  %v1336_v38 = vmax.f32 %v1328_v39, 0.0  ;;  %v1329_v46 = vadd.f32 %v1800_v55, %v1314_v10  ;;  %v1318_v16 = vadd.f32 %v1317_v37, %v1265_v61  ;;  %v1267_v45 = vadd.f32 %v1266_v30, %v1177_v20 }
 0x422   : > { %v1268_v27 = vpop.f32.mrf.mxu1 }
 0x423   : > { %1344 = vst [vmem:[%s2870_s22 + $0x10] sm:$0xff] %v1336_v38  ;;  %v1337_v2 = vmax.f32 %v1329_v46, 0.0  ;;  %v1330_v23 = vadd.f32 %v1801_v17, %v1318_v16  ;;  %v1320_v14 = vadd.f32 %v1319_v59, %v1267_v45  ;;  %v1269_v41 = vadd.f32 %v1268_v27, %v1182_v15 }
 0x424   : > { %v1270_v13 = vpop.f32.mrf.mxu1 }
 0x425   : > { %1345 = vst [vmem:[%s2870_s22 + $0x18] sm:$0xff] %v1337_v2  ;;  %v1338_v49 = vmax.f32 %v1330_v23, 0.0  ;;  %v1331_v21 = vadd.f32 %v1802_v9, %v1320_v14  ;;  %v1322_v11 = vadd.f32 %v1321_v36, %v1269_v41  ;;  %v1271_v57 = vadd.f32 %v1270_v13, %v1182_v15 }
 0x427   : > { %1346 = vst [vmem:[%s2870_s22 + $0x20] sm:$0xff] %v1338_v49  ;;  %v1339_v28 = vmax.f32 %v1331_v21, 0.0  ;;  %v1332_v42 = vadd.f32 %v1803_v19, %v1322_v11  ;;  %v1324_v58 = vadd.f32 %v1323_v3, %v1271_v57 }
 0x429   : > { %1347 = vst [vmem:[%s2870_s22 + $0x28] sm:$0xff] %v1339_v28  ;;  %v1340_v54 = vmax.f32 %v1332_v42, 0.0  ;;  %v1333_v31 = vadd.f32 %v1804_v33, %v1324_v58 }
 0x42b   : > { %1348 = vst [vmem:[%s2870_s22 + $0x30] sm:$0xff] %v1340_v54  ;;  %v1341_v26 = vmax.f32 %v1333_v31, 0.0 }
 0x42d   : > { %1349 = vst [vmem:[%s2870_s22 + $0x38] sm:$0xff] %v1341_v26 }
 0x42e PF: > { %s13_s12 = sadd.s32 1, %s1811_s12  }
 0x42f   : > { %p10_p4 = scmp.ge.s32.totalorder %s13_s12, 4  }
 0x431   :  { %12 = sbr.rel (!%p10_p4) target bundleno = 1 (0x1), region = 64 }

</bundles_post_ra>
